<compile_context>
chip_gen: v6e
topology: v6e:2x2x1
jax: 0.10.0
libtpu: 0.0.40
codegen_flags: <defaults>
</compile_context>

<pallas_src>
import functools

import jax
import jax.numpy as jnp
from jax.experimental import pallas as pl
from jax.experimental.pallas import tpu as pltpu


def _round_up(n, m):
    return ((n + m - 1) // m) * m


# ----------------------------------------------------------------------------
# Pallas kernel: fused dense FeedForward stack
#   for each layer l:  h = relu(h @ W1_l + b1_l) @ W2_l + b2_l
# (dropout is identity at inference time)
# ----------------------------------------------------------------------------
def _dense_stack_kernel(x_ref, *refs, num_layers):
    o_ref = refs[-1]
    w_refs = refs[:-1]                      # (w1, b1, w2, b2) per layer
    # In-kernel cast (free VPU work hidden under the matmuls) instead of a
    # wrapper-side padded/cast HBM copy.
    h = x_ref[...].astype(jnp.float32)      # (tile_m, d0)
    for l in range(num_layers):             # static unroll: layer count static
        w1, b1, w2, b2 = w_refs[4 * l: 4 * l + 4]
        a = jnp.dot(h.astype(jnp.bfloat16), w1[...],
                    preferred_element_type=jnp.float32) + b1[...]
        a = jnp.maximum(a, 0.0)             # ReLU; Dropout = identity (eval)
        h = jnp.dot(a.astype(jnp.bfloat16), w2[...],
                    preferred_element_type=jnp.float32) + b2[...]
    o_ref[...] = h.astype(o_ref.dtype)


def _vmem_cap_bytes():
    """Per-generation usable VMEM cap (leave ~25% headroom for the compiler)."""
    try:
        cap = int(pltpu.get_tpu_info().vmem_capacity_bytes)
    except Exception:
        cap = 64 * 2**20                    # conservative (v7x: 64 MiB / TC)
    return max(16 * 2**20, (cap * 3) // 4)


def _pick_tile_m(B, tile_m_max=512):
    """Pick the M tile: as large as possible (feed full MXU rows, amortize
    weight traffic), a multiple of 8 sublanes, and >= 2 grid steps when there
    is enough work so v7x's two TensorCores can share the parallel axis."""
    if B > tile_m_max:
        return tile_m_max                   # multiple of 8; last tile masked
    if B >= 256:
        return _round_up(-(-B // 2), 8)     # 2-way split for megacore
    return B                                # single full-array tile


def dense_stack(x2d, params, *, out_dtype=jnp.float32):
    """x2d: (B, d0) activations; params: list of (w1, b1, w2, b2), each block
    mapping d0 -> d_ff -> d0.  Returns (B, d0) in out_dtype (default f32; pass
    bfloat16 to halve output HBM writeback if downstream accepts it)."""
    B, d0 = x2d.shape
    num_layers = len(params)
    d_out = params[-1][3].shape[-1]         # == d0 for a consistent chain
    max_dff = max(p[0].shape[-1] for p in params)

    tile_m = _pick_tile_m(B)
    grid = (pl.cdiv(B, tile_m),)

    # Matmul operands in bf16 (MXU-native); biases stay f32.
    flat_w = []
    for (w1, b1, w2, b2) in params:
        flat_w += [w1.astype(jnp.bfloat16), b1, w2.astype(jnp.bfloat16), b2]
    bytes_w = sum(int(w.size) * w.dtype.itemsize for w in flat_w)

    def build(single_buffer_weights):
        w_specs = []
        for w in flat_w:
            if single_buffer_weights:
                # Constant index_map -> loaded once and resident across the M
                # tiles; single buffer halves the weight VMEM footprint vs the
                # default double buffering.
                spec = pl.BlockSpec(w.shape, lambda i: (0, 0),
                                    pipeline_mode=pl.Buffered(buffer_count=1))
            else:
                spec = pl.BlockSpec(w.shape, lambda i: (0, 0))
            w_specs.append(spec)

        weight_bufs = 1 if single_buffer_weights else 2
        need = (weight_bufs * bytes_w
                + 2 * tile_m * d0 * x2d.dtype.itemsize               # x tile x2
                + 2 * tile_m * d_out * jnp.dtype(out_dtype).itemsize # out x2
                + 2 * tile_m * (max_dff + d0) * 4                    # f32 temps
                + 2 * 2**20)                                         # scratch
        vmem_limit = max(8 * 2**20, min(_vmem_cap_bytes(), int(need)))
        # TODO(synk): if `need` exceeds the generation cap, weights no longer
        # fit resident -> K-tiled streaming path needed (see header TODO).

        return pl.pallas_call(
            functools.partial(_dense_stack_kernel, num_layers=num_layers),
            out_shape=jax.ShapeDtypeStruct((B, d_out), out_dtype),
            grid=grid,
            in_specs=[pl.BlockSpec((tile_m, d0), lambda i: (i, 0))] + w_specs,
            out_specs=pl.BlockSpec((tile_m, d_out), lambda i: (i, 0)),
            compiler_params=pltpu.CompilerParams(
                dimension_semantics=("parallel",),
                vmem_limit_bytes=vmem_limit,
            ),
        )

    try:
        return build(single_buffer_weights=True)(x2d, *flat_w)
    except Exception:
        # Fallback if this JAX/Mosaic build rejects Buffered(1) weight specs.
        return build(single_buffer_weights=False)(x2d, *flat_w)


# ----------------------------------------------------------------------------
# Parameter initialization (deterministic, mimics nn.Linear default init)
# ----------------------------------------------------------------------------
def _init_linear(key, d_in, d_out):
    """Returns (W_T, b) with W_T shaped (d_in, d_out), b shaped (1, d_out)."""
    k_w, k_b = jax.random.split(key)
    bound = 1.0 / float(d_in) ** 0.5
    # PyTorch stores weight as (d_out, d_in); we keep its transpose so the
    # in-kernel matmul is lane-contiguous.
    w_t = jax.random.uniform(k_w, (d_in, d_out), jnp.float32, -bound, bound)
    b = jax.random.uniform(k_b, (1, d_out), jnp.float32, -bound, bound)
    return w_t, b


def init_monolingual_encoder_params(key, seq_len, d_model, dense_layers):
    ff_dims = [seq_len * d_model] + list(dense_layers)
    # FeedForward(ff_dims[i], ff_dims[i+1]) maps ff_dims[i] -> ff_dims[i] (ln2
    # projects back), so the chained stack is only dimension-consistent when
    # ff_dims[0..n-2] are all equal.  Validate instead of crashing at trace time.
    for i in range(len(ff_dims) - 2):
        if ff_dims[i] != ff_dims[i + 1]:
            raise ValueError(
                f"dense_layers yield a dimension-inconsistent chain: {ff_dims}")
    params = []
    for i in range(len(ff_dims) - 1):
        d_in, d_ff = ff_dims[i], ff_dims[i + 1]
        key, k1, k2 = jax.random.split(key, 3)
        w1, b1 = _init_linear(k1, d_in, d_ff)   # ln1: d_in -> d_ff
        w2, b2 = _init_linear(k2, d_ff, d_in)   # ln2: d_ff -> d_in
        params.append((w1, b1, w2, b2))
    return params


# ----------------------------------------------------------------------------
# MonolingualEncoder forward
# ----------------------------------------------------------------------------
def monolingual_encoder_forward(x, params):
    """x: (B, seq_len, d_model) -> (B, seq_len * d_model)."""
    B = x.shape[0]
    # TODO(synk): mhs_layers (TransformerBlock stack) undefined in the provided
    # source -> identity pass-through.
    h = x.reshape(B, -1)
    return dense_stack(h, params)


# ----------------------------------------------------------------------------
# Reference (pure JAX, same bf16-input / f32-accumulate precision as kernel)
# ----------------------------------------------------------------------------
def reference_forward(x, params):
    B = x.shape[0]
    h = x.reshape(B, -1)
    for (w1, b1, w2, b2) in params:
        a = jnp.dot(h.astype(jnp.bfloat16), w1.astype(jnp.bfloat16),
                    preferred_element_type=jnp.float32) + b1
        a = jnp.maximum(a, 0.0)
        h = jnp.dot(a.astype(jnp.bfloat16), w2.astype(jnp.bfloat16),
                    preferred_element_type=jnp.float32) + b2
    return h


if __name__ == "__main__":
    # Small, module-consistent shapes: seq_len*d_model = 256; hidden dims are
    # multiples of 128 (lane/MXU friendly) and keep the FF chain consistent.
    batch = 2
    seq_len = 8
    d_model = 32
    dense_layers = [256, 128]
    dropout = 0.1  # identity in eval mode

    key = jax.random.PRNGKey(0)
    k_x, k_p = jax.random.split(key)

    x = jax.random.normal(k_x, (batch, seq_len, d_model), jnp.float32)
    params = init_monolingual_encoder_params(k_p, seq_len, d_model, dense_layers)

    out = jax.block_until_ready(monolingual_encoder_forward(x, params))
    ref = reference_forward(x, params)

    assert out.shape == (batch, seq_len * d_model), out.shape
    assert jnp.allclose(out, ref, atol=2e-2, rtol=2e-2), "mismatch vs reference"

    print("KERNEL_OK")
</pallas_src>

<mosaic_0001>
module attributes {stable_mosaic.version = 11 : i64} {
  func.func @_dense_stack_kernel(%arg0: i32, %arg1: memref<2x256xf32, #tpu.memory_space<vmem>>, %arg2: memref<256x256xbf16, #tpu.memory_space<vmem>>, %arg3: memref<1x256xf32, #tpu.memory_space<vmem>>, %arg4: memref<256x256xbf16, #tpu.memory_space<vmem>>, %arg5: memref<1x256xf32, #tpu.memory_space<vmem>>, %arg6: memref<256x128xbf16, #tpu.memory_space<vmem>>, %arg7: memref<1x128xf32, #tpu.memory_space<vmem>>, %arg8: memref<128x256xbf16, #tpu.memory_space<vmem>>, %arg9: memref<1x256xf32, #tpu.memory_space<vmem>>, %arg10: memref<2x256xf32, #tpu.memory_space<vmem>>) attributes {dimension_semantics = [#tpu.dimension_semantics<parallel>], iteration_bounds = array<i64: 1>, scalar_prefetch = 0 : i64, scratch_operands = 0 : i64, tpu.core_type = #tpu.core_type<tc>, window_params = [{transform_indices = @transform_0, window_bounds = array<i64: 2, 256>}, {pipeline_mode = #tpu.pipeline_mode<synchronous>, transform_indices = @transform_1, window_bounds = array<i64: 256, 256>}, {pipeline_mode = #tpu.pipeline_mode<synchronous>, transform_indices = @transform_2, window_bounds = array<i64: 1, 256>}, {pipeline_mode = #tpu.pipeline_mode<synchronous>, transform_indices = @transform_3, window_bounds = array<i64: 256, 256>}, {pipeline_mode = #tpu.pipeline_mode<synchronous>, transform_indices = @transform_4, window_bounds = array<i64: 1, 256>}, {pipeline_mode = #tpu.pipeline_mode<synchronous>, transform_indices = @transform_5, window_bounds = array<i64: 256, 128>}, {pipeline_mode = #tpu.pipeline_mode<synchronous>, transform_indices = @transform_6, window_bounds = array<i64: 1, 128>}, {pipeline_mode = #tpu.pipeline_mode<synchronous>, transform_indices = @transform_7, window_bounds = array<i64: 128, 256>}, {pipeline_mode = #tpu.pipeline_mode<synchronous>, transform_indices = @transform_8, window_bounds = array<i64: 1, 256>}, {transform_indices = @transform_9, window_bounds = array<i64: 2, 256>}]} {
    %c0 = arith.constant 0 : index
    %c0_0 = arith.constant 0 : index
    %0 = vector.load %arg1[%c0, %c0_0] : memref<2x256xf32, #tpu.memory_space<vmem>>, vector<2x256xf32>
    %1 = arith.truncf %0 : vector<2x256xf32> to vector<2x256xbf16>
    %c0_1 = arith.constant 0 : index
    %c0_2 = arith.constant 0 : index
    %2 = vector.load %arg2[%c0_1, %c0_2] : memref<256x256xbf16, #tpu.memory_space<vmem>>, vector<256x256xbf16>
    %cst = arith.constant dense<0.000000e+00> : vector<2x256xf32>
    %3 = tpu.matmul %1, %2, %cst {dimension_numbers = #tpu.dot_dimension_numbers<[1], [0], [0], [1], [0, 0, 1, 1], [], []>} : vector<2x256xbf16>, vector<256x256xbf16>, vector<2x256xf32> -> vector<2x256xf32>
    %c0_3 = arith.constant 0 : index
    %c0_4 = arith.constant 0 : index
    %4 = vector.load %arg3[%c0_3, %c0_4] : memref<1x256xf32, #tpu.memory_space<vmem>>, vector<1x256xf32>
    %5 = vector.broadcast %4 : vector<1x256xf32> to vector<2x256xf32>
    %6 = arith.addf %3, %5 : vector<2x256xf32>
    %cst_5 = arith.constant 0.000000e+00 : f32
    %7 = vector.broadcast %cst_5 : f32 to vector<2x256xf32>
    %8 = arith.maximumf %6, %7 : vector<2x256xf32>
    %9 = arith.truncf %8 : vector<2x256xf32> to vector<2x256xbf16>
    %c0_6 = arith.constant 0 : index
    %c0_7 = arith.constant 0 : index
    %10 = vector.load %arg4[%c0_6, %c0_7] : memref<256x256xbf16, #tpu.memory_space<vmem>>, vector<256x256xbf16>
    %cst_8 = arith.constant dense<0.000000e+00> : vector<2x256xf32>
    %11 = tpu.matmul %9, %10, %cst_8 {dimension_numbers = #tpu.dot_dimension_numbers<[1], [0], [0], [1], [0, 0, 1, 1], [], []>} : vector<2x256xbf16>, vector<256x256xbf16>, vector<2x256xf32> -> vector<2x256xf32>
    %c0_9 = arith.constant 0 : index
    %c0_10 = arith.constant 0 : index
    %12 = vector.load %arg5[%c0_9, %c0_10] : memref<1x256xf32, #tpu.memory_space<vmem>>, vector<1x256xf32>
    %13 = vector.broadcast %12 : vector<1x256xf32> to vector<2x256xf32>
    %14 = arith.addf %11, %13 : vector<2x256xf32>
    %15 = arith.truncf %14 : vector<2x256xf32> to vector<2x256xbf16>
    %c0_11 = arith.constant 0 : index
    %c0_12 = arith.constant 0 : index
    %16 = vector.load %arg6[%c0_11, %c0_12] : memref<256x128xbf16, #tpu.memory_space<vmem>>, vector<256x128xbf16>
    %cst_13 = arith.constant dense<0.000000e+00> : vector<2x128xf32>
    %17 = tpu.matmul %15, %16, %cst_13 {dimension_numbers = #tpu.dot_dimension_numbers<[1], [0], [0], [1], [0, 0, 1, 1], [], []>} : vector<2x256xbf16>, vector<256x128xbf16>, vector<2x128xf32> -> vector<2x128xf32>
    %c0_14 = arith.constant 0 : index
    %c0_15 = arith.constant 0 : index
    %18 = vector.load %arg7[%c0_14, %c0_15] : memref<1x128xf32, #tpu.memory_space<vmem>>, vector<1x128xf32>
    %19 = vector.broadcast %18 : vector<1x128xf32> to vector<2x128xf32>
    %20 = arith.addf %17, %19 : vector<2x128xf32>
    %cst_16 = arith.constant 0.000000e+00 : f32
    %21 = vector.broadcast %cst_16 : f32 to vector<2x128xf32>
    %22 = arith.maximumf %20, %21 : vector<2x128xf32>
    %23 = arith.truncf %22 : vector<2x128xf32> to vector<2x128xbf16>
    %c0_17 = arith.constant 0 : index
    %c0_18 = arith.constant 0 : index
    %24 = vector.load %arg8[%c0_17, %c0_18] : memref<128x256xbf16, #tpu.memory_space<vmem>>, vector<128x256xbf16>
    %cst_19 = arith.constant dense<0.000000e+00> : vector<2x256xf32>
    %25 = tpu.matmul %23, %24, %cst_19 {dimension_numbers = #tpu.dot_dimension_numbers<[1], [0], [0], [1], [0, 0, 1, 1], [], []>} : vector<2x128xbf16>, vector<128x256xbf16>, vector<2x256xf32> -> vector<2x256xf32>
    %c0_20 = arith.constant 0 : index
    %c0_21 = arith.constant 0 : index
    %26 = vector.load %arg9[%c0_20, %c0_21] : memref<1x256xf32, #tpu.memory_space<vmem>>, vector<1x256xf32>
    %27 = vector.broadcast %26 : vector<1x256xf32> to vector<2x256xf32>
    %28 = arith.addf %25, %27 : vector<2x256xf32>
    %c0_22 = arith.constant 0 : index
    %c0_23 = arith.constant 0 : index
    %29 = vector.load %arg10[%c0_22, %c0_23] : memref<2x256xf32, #tpu.memory_space<vmem>>, vector<2x256xf32>
    tpu.vector_store %arg10[%c0_22, %c0_23], %28 {strides = array<i32>} : memref<2x256xf32, #tpu.memory_space<vmem>>, vector<2x256xf32>,
    return
  }
  func.func @transform_0(%arg0: i32) -> (i32, i32) {
    %c0_i32 = arith.constant 0 : i32
    %c0_i32_0 = arith.constant 0 : i32
    return %arg0, %c0_i32 : i32, i32
  }
  func.func @transform_1(%arg0: i32) -> (i32, i32) {
    %c0_i32 = arith.constant 0 : i32
    %c0_i32_0 = arith.constant 0 : i32
    %c0_i32_1 = arith.constant 0 : i32
    return %c0_i32, %c0_i32_0 : i32, i32
  }
  func.func @transform_2(%arg0: i32) -> (i32, i32) {
    %c0_i32 = arith.constant 0 : i32
    %c0_i32_0 = arith.constant 0 : i32
    %c0_i32_1 = arith.constant 0 : i32
    return %c0_i32, %c0_i32_0 : i32, i32
  }
  func.func @transform_3(%arg0: i32) -> (i32, i32) {
    %c0_i32 = arith.constant 0 : i32
    %c0_i32_0 = arith.constant 0 : i32
    %c0_i32_1 = arith.constant 0 : i32
    return %c0_i32, %c0_i32_0 : i32, i32
  }
  func.func @transform_4(%arg0: i32) -> (i32, i32) {
    %c0_i32 = arith.constant 0 : i32
    %c0_i32_0 = arith.constant 0 : i32
    %c0_i32_1 = arith.constant 0 : i32
    return %c0_i32, %c0_i32_0 : i32, i32
  }
  func.func @transform_5(%arg0: i32) -> (i32, i32) {
    %c0_i32 = arith.constant 0 : i32
    %c0_i32_0 = arith.constant 0 : i32
    %c0_i32_1 = arith.constant 0 : i32
    return %c0_i32, %c0_i32_0 : i32, i32
  }
  func.func @transform_6(%arg0: i32) -> (i32, i32) {
    %c0_i32 = arith.constant 0 : i32
    %c0_i32_0 = arith.constant 0 : i32
    %c0_i32_1 = arith.constant 0 : i32
    return %c0_i32, %c0_i32_0 : i32, i32
  }
  func.func @transform_7(%arg0: i32) -> (i32, i32) {
    %c0_i32 = arith.constant 0 : i32
    %c0_i32_0 = arith.constant 0 : i32
    %c0_i32_1 = arith.constant 0 : i32
    return %c0_i32, %c0_i32_0 : i32, i32
  }
  func.func @transform_8(%arg0: i32) -> (i32, i32) {
    %c0_i32 = arith.constant 0 : i32
    %c0_i32_0 = arith.constant 0 : i32
    %c0_i32_1 = arith.constant 0 : i32
    return %c0_i32, %c0_i32_0 : i32, i32
  }
  func.func @transform_9(%arg0: i32) -> (i32, i32) {
    %c0_i32 = arith.constant 0 : i32
    %c0_i32_0 = arith.constant 0 : i32
    return %arg0, %c0_i32 : i32, i32
  }
}

module attributes {stable_mosaic.version = 11 : i64} {
  func.func @_dense_stack_kernel(%arg0: i32, %arg1: memref<2x256xf32, #tpu.memory_space<vmem>>, %arg2: memref<256x256xbf16, #tpu.memory_space<vmem>>, %arg3: memref<1x256xf32, #tpu.memory_space<vmem>>, %arg4: memref<256x256xbf16, #tpu.memory_space<vmem>>, %arg5: memref<1x256xf32, #tpu.memory_space<vmem>>, %arg6: memref<256x128xbf16, #tpu.memory_space<vmem>>, %arg7: memref<1x128xf32, #tpu.memory_space<vmem>>, %arg8: memref<128x256xbf16, #tpu.memory_space<vmem>>, %arg9: memref<1x256xf32, #tpu.memory_space<vmem>>, %arg10: memref<2x256xf32, #tpu.memory_space<vmem>>) attributes {dimension_semantics = [#tpu.dimension_semantics<parallel>], iteration_bounds = array<i64: 1>, scalar_prefetch = 0 : i64, scratch_operands = 0 : i64, tpu.core_type = #tpu.core_type<tc>, window_params = [{transform_indices = @transform_0, window_bounds = array<i64: 2, 256>}, {pipeline_mode = #tpu.pipeline_mode<synchronous>, transform_indices = @transform_1, window_bounds = array<i64: 256, 256>}, {pipeline_mode = #tpu.pipeline_mode<synchronous>, transform_indices = @transform_2, window_bounds = array<i64: 1, 256>}, {pipeline_mode = #tpu.pipeline_mode<synchronous>, transform_indices = @transform_3, window_bounds = array<i64: 256, 256>}, {pipeline_mode = #tpu.pipeline_mode<synchronous>, transform_indices = @transform_4, window_bounds = array<i64: 1, 256>}, {pipeline_mode = #tpu.pipeline_mode<synchronous>, transform_indices = @transform_5, window_bounds = array<i64: 256, 128>}, {pipeline_mode = #tpu.pipeline_mode<synchronous>, transform_indices = @transform_6, window_bounds = array<i64: 1, 128>}, {pipeline_mode = #tpu.pipeline_mode<synchronous>, transform_indices = @transform_7, window_bounds = array<i64: 128, 256>}, {pipeline_mode = #tpu.pipeline_mode<synchronous>, transform_indices = @transform_8, window_bounds = array<i64: 1, 256>}, {transform_indices = @transform_9, window_bounds = array<i64: 2, 256>}]} {
    %c0 = arith.constant 0 : index
    %c0_0 = arith.constant 0 : index
    %0 = vector.load %arg1[%c0, %c0_0] : memref<2x256xf32, #tpu.memory_space<vmem>>, vector<2x256xf32>
    %1 = arith.truncf %0 : vector<2x256xf32> to vector<2x256xbf16>
    %c0_1 = arith.constant 0 : index
    %c0_2 = arith.constant 0 : index
    %2 = vector.load %arg2[%c0_1, %c0_2] : memref<256x256xbf16, #tpu.memory_space<vmem>>, vector<256x256xbf16>
    %cst = arith.constant dense<0.000000e+00> : vector<2x256xf32>
    %3 = tpu.matmul %1, %2, %cst {dimension_numbers = #tpu.dot_dimension_numbers<[1], [0], [0], [1], [0, 0, 1, 1], [], []>} : vector<2x256xbf16>, vector<256x256xbf16>, vector<2x256xf32> -> vector<2x256xf32>
    %c0_3 = arith.constant 0 : index
    %c0_4 = arith.constant 0 : index
    %4 = vector.load %arg3[%c0_3, %c0_4] : memref<1x256xf32, #tpu.memory_space<vmem>>, vector<1x256xf32>
    %5 = vector.broadcast %4 : vector<1x256xf32> to vector<2x256xf32>
    %6 = arith.addf %3, %5 : vector<2x256xf32>
    %cst_5 = arith.constant 0.000000e+00 : f32
    %7 = vector.broadcast %cst_5 : f32 to vector<2x256xf32>
    %8 = arith.maximumf %6, %7 : vector<2x256xf32>
    %9 = arith.truncf %8 : vector<2x256xf32> to vector<2x256xbf16>
    %c0_6 = arith.constant 0 : index
    %c0_7 = arith.constant 0 : index
    %10 = vector.load %arg4[%c0_6, %c0_7] : memref<256x256xbf16, #tpu.memory_space<vmem>>, vector<256x256xbf16>
    %cst_8 = arith.constant dense<0.000000e+00> : vector<2x256xf32>
    %11 = tpu.matmul %9, %10, %cst_8 {dimension_numbers = #tpu.dot_dimension_numbers<[1], [0], [0], [1], [0, 0, 1, 1], [], []>} : vector<2x256xbf16>, vector<256x256xbf16>, vector<2x256xf32> -> vector<2x256xf32>
    %c0_9 = arith.constant 0 : index
    %c0_10 = arith.constant 0 : index
    %12 = vector.load %arg5[%c0_9, %c0_10] : memref<1x256xf32, #tpu.memory_space<vmem>>, vector<1x256xf32>
    %13 = vector.broadcast %12 : vector<1x256xf32> to vector<2x256xf32>
    %14 = arith.addf %11, %13 : vector<2x256xf32>
    %15 = arith.truncf %14 : vector<2x256xf32> to vector<2x256xbf16>
    %c0_11 = arith.constant 0 : index
    %c0_12 = arith.constant 0 : index
    %16 = vector.load %arg6[%c0_11, %c0_12] : memref<256x128xbf16, #tpu.memory_space<vmem>>, vector<256x128xbf16>
    %cst_13 = arith.constant dense<0.000000e+00> : vector<2x128xf32>
    %17 = tpu.matmul %15, %16, %cst_13 {dimension_numbers = #tpu.dot_dimension_numbers<[1], [0], [0], [1], [0, 0, 1, 1], [], []>} : vector<2x256xbf16>, vector<256x128xbf16>, vector<2x128xf32> -> vector<2x128xf32>
    %c0_14 = arith.constant 0 : index
    %c0_15 = arith.constant 0 : index
    %18 = vector.load %arg7[%c0_14, %c0_15] : memref<1x128xf32, #tpu.memory_space<vmem>>, vector<1x128xf32>
    %19 = vector.broadcast %18 : vector<1x128xf32> to vector<2x128xf32>
    %20 = arith.addf %17, %19 : vector<2x128xf32>
    %cst_16 = arith.constant 0.000000e+00 : f32
    %21 = vector.broadcast %cst_16 : f32 to vector<2x128xf32>
    %22 = arith.maximumf %20, %21 : vector<2x128xf32>
    %23 = arith.truncf %22 : vector<2x128xf32> to vector<2x128xbf16>
    %c0_17 = arith.constant 0 : index
    %c0_18 = arith.constant 0 : index
    %24 = vector.load %arg8[%c0_17, %c0_18] : memref<128x256xbf16, #tpu.memory_space<vmem>>, vector<128x256xbf16>
    %cst_19 = arith.constant dense<0.000000e+00> : vector<2x256xf32>
    %25 = tpu.matmul %23, %24, %cst_19 {dimension_numbers = #tpu.dot_dimension_numbers<[1], [0], [0], [1], [0, 0, 1, 1], [], []>} : vector<2x128xbf16>, vector<128x256xbf16>, vector<2x256xf32> -> vector<2x256xf32>
    %c0_20 = arith.constant 0 : index
    %c0_21 = arith.constant 0 : index
    %26 = vector.load %arg9[%c0_20, %c0_21] : memref<1x256xf32, #tpu.memory_space<vmem>>, vector<1x256xf32>
    %27 = vector.broadcast %26 : vector<1x256xf32> to vector<2x256xf32>
    %28 = arith.addf %25, %27 : vector<2x256xf32>
    %c0_22 = arith.constant 0 : index
    %c0_23 = arith.constant 0 : index
    %29 = vector.load %arg10[%c0_22, %c0_23] : memref<2x256xf32, #tpu.memory_space<vmem>>, vector<2x256xf32>
    tpu.vector_store %arg10[%c0_22, %c0_23], %28 {strides = array<i32>} : memref<2x256xf32, #tpu.memory_space<vmem>>, vector<2x256xf32>,
    return
  }
  func.func @transform_0(%arg0: i32) -> (i32, i32) {
    %c0_i32 = arith.constant 0 : i32
    %c0_i32_0 = arith.constant 0 : i32
    return %arg0, %c0_i32 : i32, i32
  }
  func.func @transform_1(%arg0: i32) -> (i32, i32) {
    %c0_i32 = arith.constant 0 : i32
    %c0_i32_0 = arith.constant 0 : i32
    %c0_i32_1 = arith.constant 0 : i32
    return %c0_i32, %c0_i32_0 : i32, i32
  }
  func.func @transform_2(%arg0: i32) -> (i32, i32) {
    %c0_i32 = arith.constant 0 : i32
    %c0_i32_0 = arith.constant 0 : i32
    %c0_i32_1 = arith.constant 0 : i32
    return %c0_i32, %c0_i32_0 : i32, i32
  }
  func.func @transform_3(%arg0: i32) -> (i32, i32) {
    %c0_i32 = arith.constant 0 : i32
    %c0_i32_0 = arith.constant 0 : i32
    %c0_i32_1 = arith.constant 0 : i32
    return %c0_i32, %c0_i32_0 : i32, i32
  }
  func.func @transform_4(%arg0: i32) -> (i32, i32) {
    %c0_i32 = arith.constant 0 : i32
    %c0_i32_0 = arith.constant 0 : i32
    %c0_i32_1 = arith.constant 0 : i32
    return %c0_i32, %c0_i32_0 : i32, i32
  }
  func.func @transform_5(%arg0: i32) -> (i32, i32) {
    %c0_i32 = arith.constant 0 : i32
    %c0_i32_0 = arith.constant 0 : i32
    %c0_i32_1 = arith.constant 0 : i32
    return %c0_i32, %c0_i32_0 : i32, i32
  }
  func.func @transform_6(%arg0: i32) -> (i32, i32) {
    %c0_i32 = arith.constant 0 : i32
    %c0_i32_0 = arith.constant 0 : i32
    %c0_i32_1 = arith.constant 0 : i32
    return %c0_i32, %c0_i32_0 : i32, i32
  }
  func.func @transform_7(%arg0: i32) -> (i32, i32) {
    %c0_i32 = arith.constant 0 : i32
    %c0_i32_0 = arith.constant 0 : i32
    %c0_i32_1 = arith.constant 0 : i32
    return %c0_i32, %c0_i32_0 : i32, i32
  }
  func.func @transform_8(%arg0: i32) -> (i32, i32) {
    %c0_i32 = arith.constant 0 : i32
    %c0_i32_0 = arith.constant 0 : i32
    %c0_i32_1 = arith.constant 0 : i32
    return %c0_i32, %c0_i32_0 : i32, i32
  }
  func.func @transform_9(%arg0: i32) -> (i32, i32) {
    %c0_i32 = arith.constant 0 : i32
    %c0_i32_0 = arith.constant 0 : i32
    return %arg0, %c0_i32 : i32, i32
  }
}

</mosaic_0001>

<bundles_post_ra>
// kernel: tpu_custom_call.1
= control target key start
LH: loop header
LB: loop body
LE: loop exit
PB: predicated region body
PF: predicated region fallthrough
CT: control target
= control target key end

     0   :  { %14 = vsyncpa [#allocation3], 0  ;;  %s1477_s0 = inlined_call_operand.hbm [shape: f32[2,256], index: 0, kind: input, shape index: {}]   ;;  %s1478_s1 = inlined_call_operand.hbm [shape: bf16[256,256], index: 1, kind: input, shape index: {}]   ;;  %s1479_s2 = inlined_call_operand.vmem [shape: f32[1,256], index: 2, kind: input, shape index: {}]   ;;  %s1480_s3 = inlined_call_operand.hbm [shape: bf16[256,256], index: 3, kind: input, shape index: {}]   ;;  %s1481_s4 = inlined_call_operand.vmem [shape: f32[1,256], index: 4, kind: input, shape index: {}]   ;;  %s1482_s5 = inlined_call_operand.hbm [shape: bf16[256,128], index: 5, kind: input, shape index: {}]   ;;  %s1483_s6 = inlined_call_operand.vmem [shape: f32[1,128], index: 6, kind: input, shape index: {}]   ;;  %s1484_s7 = inlined_call_operand.hbm [shape: bf16[128,256], index: 7, kind: input, shape index: {}]   ;;  %s1485_s8 = inlined_call_operand.vmem [shape: f32[1,256], index: 8, kind: input, shape index: {}]   ;;  %s1486_s9 = inlined_call_operand.hbm [shape: f32[2,256], index: 9, kind: output, shape index: {}]  }
   0x1   :  { %15 = vsyncpa [#allocation6], 0 }
   0x2   :  { %16 = vsyncpa [#allocation9], 0 }
   0x3   :  { %17 = vsyncpa [#allocation4], 0  ;;  %s1361_s30 = smov [#allocation5]  }
   0x4   :  { %s33_s10 = sshll.u32 %s1361_s30, 4  ;;  %s34_s10 = int_to_ptr.vmem [resolvable:$true] %s33_s10 }
   0x5   :  { %s1241_s11 = scalar_lea.vmem %s34_s10, 4096  ;;  %p1246_p1 = scmp.lt.s32.totalorder %s34_s10, %s34_s10 }
   0x6   :  { %p1242_p0 = scmp.ne.s32.totalorder %s34_s10, %s1241_s11  ;;  %p1247_p2 = scmp.lt.s32.totalorder %s1241_s11, %s1241_s11 }
   0x8   :  { %p1248_p3 = por %p1247_p2, %p1246_p1 }
   0xa   :  { %p1249_p4 = pnand %p1248_p3, %p1242_p0 }
   0xc   :  { %1252 = shalt.err (!%p1249_p4)
}
   0xd   :  { %s1362_s12 = smov 128   ;;  %s1363_s13 = smov 8  }
   0xe   :  { %39 = dma.hbm_to_vmem [thread:$0]  %s1478_s1, 4096, %s34_s10, [#allocation6], %s1362_s12, %s1362_s12, %s1363_s13  }
   0xf   :  { %s1364_s16 = smov [#allocation8]  }
  0x10   :  { %s61_s17 = sshll.u32 %s1364_s16, 4  ;;  %s62_s17 = int_to_ptr.vmem [resolvable:$true] %s61_s17 }
  0x11   :  { %s1261_s18 = scalar_lea.vmem %s62_s17, 2048  ;;  %p1266_p6 = scmp.lt.s32.totalorder %s62_s17, %s62_s17 }
  0x12   :  { %p1262_p5 = scmp.ne.s32.totalorder %s62_s17, %s1261_s18  ;;  %p1267_p7 = scmp.lt.s32.totalorder %s1261_s18, %s1261_s18 }
  0x14   :  { %p1268_p8 = por %p1267_p7, %p1266_p6 }
  0x16   :  { %p1269_p9 = pnand %p1268_p8, %p1262_p5 }
  0x18   :  { %1272 = shalt.err (!%p1269_p9)
}
  0x19   :  { %s1365_s19 = smov 64   ;;  %s1366_s20 = smov 4  }
  0x1a   :  { %67 = dma.hbm_to_vmem [thread:$0]  %s1482_s5, 2048, %s62_s17, [#allocation9], %s1365_s19, %s1365_s19, %s1366_s20  }
  0x1b   :  { %s1367_s23 = smov [#allocation2]   ;;  %s1368_s25 = smov [#allocation7]  }
  0x1c   :  { %s24_s24 = sshll.u32 %s1367_s23, 4  ;;  %s47_s1 = sshll.u32 %s1368_s25, 4  ;;  %s25_s24 = int_to_ptr.vmem [resolvable:$true] %s24_s24  ;;  %s48_s1 = int_to_ptr.vmem [resolvable:$true] %s47_s1 }
  0x1d   :  { %s1281_s26 = scalar_lea.vmem %s25_s24, 64  ;;  %p1286_p11 = scmp.lt.s32.totalorder %s25_s24, %s25_s24 }
  0x1e   :  { %p1282_p10 = scmp.ne.s32.totalorder %s25_s24, %s1281_s26  ;;  %p1287_p12 = scmp.lt.s32.totalorder %s1281_s26, %s1281_s26 }
  0x20   :  { %p1288_p13 = por %p1287_p12, %p1286_p11 }
  0x22   :  { %p1289_p0 = pnand %p1288_p13, %p1282_p10 }
  0x24   :  { %1292 = shalt.err (!%p1289_p0)
}
  0x25   :  { %27 = dma.hbm_to_vmem [thread:$0]  %s1477_s0, 64, %s25_s24, [#allocation3]  }
  0x26   :  { %s1301_s29 = scalar_lea.vmem %s48_s1, 4096  ;;  %p1306_p2 = scmp.lt.s32.totalorder %s48_s1, %s48_s1 }
  0x27   :  { %p1302_p1 = scmp.ne.s32.totalorder %s48_s1, %s1301_s29  ;;  %p1307_p3 = scmp.lt.s32.totalorder %s1301_s29, %s1301_s29 }
  0x29   :  { %p1308_p4 = por %p1307_p3, %p1306_p2 }
  0x2b   :  { %p1309_p5 = pnand %p1308_p4, %p1302_p1 }
  0x2d   :  { %1312 = shalt.err (!%p1309_p5)
}
  0x2e   :  { %53 = dma.hbm_to_vmem [thread:$0]  %s1480_s3, 4096, %s48_s1, [#allocation6], %s1362_s12, %s1362_s12, %s1363_s13  }
  0x2f   :  { %s1369_s10 = smov [#allocation10]  }
  0x30   :  { %s75_s11 = sshll.u32 %s1369_s10, 4  ;;  %s76_s11 = int_to_ptr.vmem [resolvable:$true] %s75_s11 }
  0x31   :  { %s1321_s14 = scalar_lea.vmem %s76_s11, 2048  ;;  %p1326_p7 = scmp.lt.s32.totalorder %s76_s11, %s76_s11 }
  0x32   :  { %p1322_p6 = scmp.ne.s32.totalorder %s76_s11, %s1321_s14  ;;  %p1327_p8 = scmp.lt.s32.totalorder %s1321_s14, %s1321_s14 }
  0x34   :  { %p1328_p9 = por %p1327_p8, %p1326_p7 }
  0x36   :  { %p1329_p10 = pnand %p1328_p9, %p1322_p6 }
  0x38   :  { %1332 = shalt.err (!%p1329_p10)
}
  0x39   :  { %81 = dma.hbm_to_vmem [thread:$0]  %s1484_s7, 2048, %s76_s11, [#allocation9], %s1362_s12, %s1362_s12, %s1363_s13  }
  0x3a   :  { %1353 = dma.done.wait [#allocation3], 64  }
  0x3b   :  { %1354 = vsyncadd [#allocation3], 4294967232 }
  0x3c   :  { %1355 = dma.done.wait [#allocation6], 8192  }
  0x3d   :  { %1356 = vsyncadd [#allocation6], 4294959104 }
  0x3e   :  { %1357 = dma.done.wait [#allocation9], 4096  }
  0x3f   :  { %1358 = vsyncadd [#allocation9], 4294963200  ;;  %v1097_v0 = vld [vmem:[#allocation5 + $0x74] ss:$8 sps:$4 sm:$0xff]   ;;  %v1099_v1 = vld [vmem:[#allocation5 + $0x70] ss:$8 sps:$4 sm:$0xff]  }
  0x40   :  { %318 = vmatprep.subr.bf16.mxu0 %v1097_v0  ;;  %v1100_v2 = vld [vmem:[#allocation5 + $0x64] ss:$8 sps:$4 sm:$0xff]   ;;  %v1102_v3 = vld [vmem:[#allocation5 + $0x60] ss:$8 sps:$4 sm:$0xff]   ;;  %v1103_v4 = vld [vmem:[#allocation5 + $0x54] ss:$8 sps:$4 sm:$0xff]  }
  0x41   :  { %319 = vmatpush1.bf16.msra.mxu0 %v1099_v1  ;;  %v1105_v5 = vld [vmem:[#allocation5 + $0x50] ss:$8 sps:$4 sm:$0xff]   ;;  %v1106_v6 = vld [vmem:[#allocation5 + $0x44] ss:$8 sps:$4 sm:$0xff]   ;;  %v1108_v7 = vld [vmem:[#allocation5 + $0x40] ss:$8 sps:$4 sm:$0xff]  }
  0x42   :  { %320 = vmatprep.subr.bf16.mxu0 %v1100_v2  ;;  %v1109_v8 = vld [vmem:[#allocation5 + $0x34] ss:$8 sps:$4 sm:$0xff]   ;;  %v1111_v9 = vld [vmem:[#allocation5 + $0x30] ss:$8 sps:$4 sm:$0xff]   ;;  %v1112_v10 = vld [vmem:[#allocation5 + $0x24] ss:$8 sps:$4 sm:$0xff]  }
  0x43   :  { %v1114_v11 = vld [vmem:[#allocation5 + $0x20] ss:$8 sps:$4 sm:$0xff]   ;;  %v1115_v12 = vld [vmem:[#allocation5 + $0x14] ss:$8 sps:$4 sm:$0xff]   ;;  %v1117_v13 = vld [vmem:[#allocation5 + $0x10] ss:$8 sps:$4 sm:$0xff]  }
  0x44   :  { %v1446_v14 = vld.sshfl [vmem:[#allocation2] sm:$0x33 pattern:$0x76325410]  ;;  %v1147_v17 = vld [vmem:[#allocation7 + $0x70] ss:$8 sps:$4 sm:$0xff]  }
  0x45   :  { %321 = vmatpush1.bf16.msra.mxu0 %v1102_v3  ;;  %v109_v15 = vcombine.high %v1446_v14, %v1446_v14  ;;  %v1145_v16 = vld [vmem:[#allocation7 + $0x74] ss:$8 sps:$4 sm:$0xff]   ;;  %v1118_v18 = vld [vmem:[#allocation5 + $0x4] ss:$8 sps:$4 sm:$0xff]   ;;  %v1150_v21 = vld [vmem:[#allocation7 + $0x60] ss:$8 sps:$4 sm:$0xff]   ;;  %v112_v57 = vpack.c.bf16 %v1446_v14, %v1446_v14 }
  0x46   :  { %322 = vmatprep.subr.bf16.mxu0 %v1103_v4  ;;  %567 = vmatprep.subr.bf16.mxu1 %v1145_v16  ;;  %v1148_v20 = vld [vmem:[#allocation7 + $0x64] ss:$8 sps:$4 sm:$0xff]   ;;  %v1151_v22 = vld [vmem:[#allocation7 + $0x54] ss:$8 sps:$4 sm:$0xff]   ;;  %v1120_v23 = vld [vmem:[#allocation5] ss:$8 sps:$4 sm:$0xff]   ;;  %v148_v16 = vlaneseq }
  0x47   :  { %v113_v19 = vpack.c.bf16 %v109_v15, %v109_v15  ;;  %568 = vmatpush1.bf16.msra.mxu1 %v1147_v17  ;;  %v1121_v24 = vld [vmem:[#allocation5 + $0xf4] ss:$8 sps:$4 sm:$0xff]   ;;  %v1153_v25 = vld [vmem:[#allocation7 + $0x50] ss:$8 sps:$4 sm:$0xff]   ;;  %v1154_v26 = vld [vmem:[#allocation7 + $0x44] ss:$8 sps:$4 sm:$0xff]  }
  0x48   :  { %569 = vmatprep.subr.bf16.mxu1 %v1148_v20  ;;  %v1123_v27 = vld [vmem:[#allocation5 + $0xf0] ss:$8 sps:$4 sm:$0xff]   ;;  %v1124_v28 = vld [vmem:[#allocation5 + $0xe4] ss:$8 sps:$4 sm:$0xff]   ;;  %v1156_v29 = vld [vmem:[#allocation7 + $0x40] ss:$8 sps:$4 sm:$0xff]  }
  0x49   :  { %323 = vmatpush1.bf16.msra.mxu0 %v1105_v5  ;;  %350 = vmatprep.mubr.bf16.mxu0 %v113_v19  ;;  %v1157_v30 = vld [vmem:[#allocation7 + $0x34] ss:$8 sps:$4 sm:$0xff]   ;;  %v1126_v31 = vld [vmem:[#allocation5 + $0xe0] ss:$8 sps:$4 sm:$0xff]   ;;  %v1159_v33 = vld [vmem:[#allocation7 + $0x30] ss:$8 sps:$4 sm:$0xff]  }
  0x4a   :  { %324 = vmatprep.subr.bf16.mxu0 %v1106_v6  ;;  %v1127_v32 = vld [vmem:[#allocation5 + $0xd4] ss:$8 sps:$4 sm:$0xff]   ;;  %v1160_v34 = vld [vmem:[#allocation7 + $0x24] ss:$8 sps:$4 sm:$0xff]   ;;  %v1129_v35 = vld [vmem:[#allocation5 + $0xd0] ss:$8 sps:$4 sm:$0xff]  }
  0x4b   :  { %570 = vmatpush1.bf16.msra.mxu1 %v1150_v21  ;;  %v1130_v36 = vld [vmem:[#allocation5 + $0xc4] ss:$8 sps:$4 sm:$0xff]   ;;  %v1162_v37 = vld [vmem:[#allocation7 + $0x20] ss:$8 sps:$4 sm:$0xff]   ;;  %v1163_v38 = vld [vmem:[#allocation7 + $0x14] ss:$8 sps:$4 sm:$0xff]  }
  0x4c   :  { %571 = vmatprep.subr.bf16.mxu1 %v1151_v22  ;;  %v1132_v39 = vld [vmem:[#allocation5 + $0xc0] ss:$8 sps:$4 sm:$0xff]   ;;  %v1133_v40 = vld [vmem:[#allocation5 + $0xb4] ss:$8 sps:$4 sm:$0xff]   ;;  %v1165_v41 = vld [vmem:[#allocation7 + $0x10] ss:$8 sps:$4 sm:$0xff]  }
  0x4d   :  { %325 = vmatpush1.bf16.msra.mxu0 %v1108_v7  ;;  %v1166_v42 = vld [vmem:[#allocation7 + $0x4] ss:$8 sps:$4 sm:$0xff]   ;;  %v1135_v43 = vld [vmem:[#allocation5 + $0xb0] ss:$8 sps:$4 sm:$0xff]   ;;  %v1168_v45 = vld [vmem:[#allocation7] ss:$8 sps:$4 sm:$0xff]  }
  0x4e   :  { %326 = vmatprep.subr.bf16.mxu0 %v1109_v8  ;;  %v1136_v44 = vld [vmem:[#allocation5 + $0xa4] ss:$8 sps:$4 sm:$0xff]   ;;  %v1169_v46 = vld [vmem:[#allocation7 + $0xf4] ss:$8 sps:$4 sm:$0xff]   ;;  %v1138_v47 = vld [vmem:[#allocation5 + $0xa0] ss:$8 sps:$4 sm:$0xff]  }
  0x4f   :  { %572 = vmatpush1.bf16.msra.mxu1 %v1153_v25  ;;  %v1139_v48 = vld [vmem:[#allocation5 + $0x94] ss:$8 sps:$4 sm:$0xff]   ;;  %v1171_v49 = vld [vmem:[#allocation7 + $0xf0] ss:$8 sps:$4 sm:$0xff]   ;;  %v1172_v50 = vld [vmem:[#allocation7 + $0xe4] ss:$8 sps:$4 sm:$0xff]  }
  0x50   :  { %573 = vmatprep.subr.bf16.mxu1 %v1154_v26  ;;  %v1141_v51 = vld [vmem:[#allocation5 + $0x90] ss:$8 sps:$4 sm:$0xff]   ;;  %v1142_v52 = vld [vmem:[#allocation5 + $0x84] ss:$8 sps:$4 sm:$0xff]   ;;  %v1174_v53 = vld [vmem:[#allocation7 + $0xe0] ss:$8 sps:$4 sm:$0xff]  }
  0x51   :  { %327 = vmatpush1.bf16.msra.mxu0 %v1111_v9  ;;  %v1175_v54 = vld [vmem:[#allocation7 + $0xd4] ss:$8 sps:$4 sm:$0xff]   ;;  %v1144_v55 = vld [vmem:[#allocation5 + $0x80] ss:$8 sps:$4 sm:$0xff]   ;;  %v1177_v56 = vld [vmem:[#allocation7 + $0xd0] ss:$8 sps:$4 sm:$0xff]  }
  0x52   :  { %328 = vmatprep.subr.bf16.mxu0 %v1112_v10  ;;  %v1178_v58 = vld [vmem:[#allocation7 + $0xc4] ss:$8 sps:$4 sm:$0xff]   ;;  %v1180_v59 = vld [vmem:[#allocation7 + $0xc0] ss:$8 sps:$4 sm:$0xff]   ;;  %v1181_v60 = vld [vmem:[#allocation7 + $0xb4] ss:$8 sps:$4 sm:$0xff]  }
  0x53   :  { %574 = vmatpush1.bf16.msra.mxu1 %v1156_v29  ;;  %v1183_v61 = vld [vmem:[#allocation7 + $0xb0] ss:$8 sps:$4 sm:$0xff]   ;;  %v1184_v62 = vld [vmem:[#allocation7 + $0xa4] ss:$8 sps:$4 sm:$0xff]   ;;  %v1186_v63 = vld [vmem:[#allocation7 + $0xa0] ss:$8 sps:$4 sm:$0xff]  }
  0x54   :  { %575 = vmatprep.subr.bf16.mxu1 %v1157_v30  ;;  %v1187_v0 = vld [vmem:[#allocation7 + $0x94] ss:$8 sps:$4 sm:$0xff]   ;;  %v1189_v1 = vld [vmem:[#allocation7 + $0x90] ss:$8 sps:$4 sm:$0xff]   ;;  %v1190_v2 = vld [vmem:[#allocation7 + $0x84] ss:$8 sps:$4 sm:$0xff]  }
  0x55   :  { %329 = vmatpush1.bf16.msra.mxu0 %v1114_v11  ;;  %v1192_v3 = vld [vmem:[#allocation7 + $0x80] ss:$8 sps:$4 sm:$0xff]   ;;  %v1193_v4 = vld [vmem:[#allocation8 + $0x78] sm:$0xff]   ;;  %v1195_v6 = vld [vmem:[#allocation8 + $0x70] sm:$0xff]   ;;  %v149_v17 = vshrl.u32 %v148_v16, 7  ;;  %s1371_s18 = smov [#allocation11]  }
  0x56   :  { %330 = vmatprep.subr.bf16.mxu0 %v1115_v12  ;;  %v1194_v5 = vld [vmem:[#allocation8 + $0x38] sm:$0xff]   ;;  %v1196_v7 = vld [vmem:[#allocation8 + $0x30] sm:$0xff]   ;;  %v1197_v8 = vld [vmem:[#allocation8 + $0x68] sm:$0xff]  }
  0x57   :  { %576 = vmatpush1.bf16.msra.mxu1 %v1159_v33  ;;  %v1198_v9 = vld [vmem:[#allocation8 + $0x28] sm:$0xff]   ;;  %v1199_v10 = vld [vmem:[#allocation8 + $0x60] sm:$0xff]   ;;  %v1201_v12 = vld [vmem:[#allocation8 + $0x58] sm:$0xff]   ;;  %v1457_v20 = vsub.s32 1, %v149_v17 }
  0x58   :  { %577 = vmatprep.subr.bf16.mxu1 %v1160_v34  ;;  %v1200_v11 = vld [vmem:[#allocation8 + $0x20] sm:$0xff]   ;;  %v1203_v14 = vld [vmem:[#allocation8 + $0x50] sm:$0xff]   ;;  %v146_v19 = vld [vmem:[%s1479_s2] sm:$0x3] }
  0x59   :  { %331 = vmatpush1.bf16.msra.mxu0 %v1117_v13  ;;  %v1202_v13 = vld [vmem:[#allocation8 + $0x18] sm:$0xff]   ;;  %v1204_v15 = vld [vmem:[#allocation8 + $0x10] sm:$0xff]   ;;  %v155_v22 = vrot.slane %v146_v19, %v1457_v20  ;;  %v1205_v33 = vld [vmem:[#allocation8 + $0x48] sm:$0xff]  }
  0x5a   :  { %332 = vmatprep.subr.bf16.mxu0 %v1118_v18  ;;  %v1452_v18 = vsub.s32 0, %v149_v17  ;;  %v1206_v34 = vld [vmem:[#allocation8 + $0x8] sm:$0xff]  }
  0x5b   :  { %578 = vmatpush1.bf16.msra.mxu1 %v1162_v37  ;;  %v1209_v37 = vld [vmem:[#allocation10 + $0x70] ss:$8 sps:$4 sm:$0xff]  }
  0x5c   :  { %579 = vmatprep.subr.bf16.mxu1 %v1163_v38  ;;  %v151_v21 = vrot.slane %v146_v19, %v1452_v18  ;;  %v1211_v38 = vld [vmem:[#allocation10 + $0x74] ss:$8 sps:$4 sm:$0xff]  }
  0x5d   :  { %333 = vmatpush1.bf16.msra.mxu0 %v1120_v23 }
  0x5e   :  { %334 = vmatprep.subr.bf16.mxu0 %v1121_v24 }
  0x5f   :  { %580 = vmatpush1.bf16.msra.mxu1 %v1165_v41  ;;  %v1217_v41 = vld [vmem:[#allocation10 + $0x54] ss:$8 sps:$4 sm:$0xff]  }
  0x60   :  { %581 = vmatprep.subr.bf16.mxu1 %v1166_v42  ;;  %v1215_v42 = vld [vmem:[#allocation10 + $0x50] ss:$8 sps:$4 sm:$0xff]  }
  0x61   :  { %335 = vmatpush2.bf16.msra.mxu0 %v1123_v27 }
  0x62   :  { %336 = vmatprep.subr.bf16.mxu0 %v1124_v28 }
  0x63   :  { %582 = vmatpush1.bf16.msra.mxu1 %v1168_v45  ;;  %v1223_v45 = vld [vmem:[#allocation10 + $0x34] ss:$8 sps:$4 sm:$0xff]  }
  0x64   :  { %583 = vmatprep.subr.bf16.mxu1 %v1169_v46  ;;  %v1221_v46 = vld [vmem:[#allocation10 + $0x30] ss:$8 sps:$4 sm:$0xff]  }
  0x65   :  { %337 = vmatpush2.bf16.msra.mxu0 %v1126_v31 }
  0x66   :  { %338 = vmatprep.subr.bf16.mxu0 %v1127_v32 }
  0x67   :  { %584 = vmatpush2.bf16.msra.mxu1 %v1171_v49  ;;  %v395_v49 = vld [vmem:[%s1481_s4] sm:$0x3] }
  0x68   :  { %585 = vmatprep.subr.bf16.mxu1 %v1172_v50  ;;  %v400_v50 = vrot.slane %v395_v49, %v1452_v18 }
  0x69   :  { %339 = vmatpush2.bf16.msra.mxu0 %v1129_v35  ;;  %v1207_v35 = vld [vmem:[#allocation8 + $0x40] sm:$0xff]  }
  0x6a   :  { %340 = vmatprep.subr.bf16.mxu0 %v1130_v36  ;;  %v1208_v36 = vld [vmem:[#allocation8] sm:$0xff]  }
  0x6b   :  { %586 = vmatpush2.bf16.msra.mxu1 %v1174_v53 }
  0x6c   :  { %587 = vmatprep.subr.bf16.mxu1 %v1175_v54 }
  0x6d   :  { %341 = vmatpush2.bf16.msra.mxu0 %v1132_v39  ;;  %v1214_v39 = vld [vmem:[#allocation10 + $0x64] ss:$8 sps:$4 sm:$0xff]  }
  0x6e   :  { %342 = vmatprep.subr.bf16.mxu0 %v1133_v40  ;;  %v1212_v40 = vld [vmem:[#allocation10 + $0x60] ss:$8 sps:$4 sm:$0xff]  }
  0x6f   :  { %588 = vmatpush2.bf16.msra.mxu1 %v1177_v56 }
  0x70   :  { %589 = vmatprep.subr.bf16.mxu1 %v1178_v58 }
  0x71   :  { %343 = vmatpush2.bf16.msra.mxu0 %v1135_v43  ;;  %v1220_v43 = vld [vmem:[#allocation10 + $0x44] ss:$8 sps:$4 sm:$0xff]  }
  0x72   :  { %344 = vmatprep.subr.bf16.mxu0 %v1136_v44  ;;  %v1218_v44 = vld [vmem:[#allocation10 + $0x40] ss:$8 sps:$4 sm:$0xff]  }
  0x73   :  { %590 = vmatpush2.bf16.msra.mxu1 %v1180_v59 }
  0x74   :  { %591 = vmatprep.subr.bf16.mxu1 %v1181_v60  ;;  %v1229_v60 = vld [vmem:[#allocation10 + $0x14] ss:$8 sps:$4 sm:$0xff]  }
  0x75   :  { %345 = vmatpush2.bf16.msra.mxu0 %v1138_v47  ;;  %v1226_v47 = vld [vmem:[#allocation10 + $0x24] ss:$8 sps:$4 sm:$0xff]  }
  0x76   :  { %346 = vmatprep.subr.bf16.mxu0 %v1139_v48  ;;  %v1224_v48 = vld [vmem:[#allocation10 + $0x20] ss:$8 sps:$4 sm:$0xff]  }
  0x77   :  { %592 = vmatpush2.bf16.msra.mxu1 %v1183_v61  ;;  %v1227_v61 = vld [vmem:[#allocation10 + $0x10] ss:$8 sps:$4 sm:$0xff]  }
  0x78   :  { %593 = vmatprep.subr.bf16.mxu1 %v1184_v62  ;;  %v1232_v62 = vld [vmem:[#allocation10 + $0x4] ss:$8 sps:$4 sm:$0xff]  }
  0x79   :  { %347 = vmatpush2.bf16.msra.mxu0 %v1141_v51  ;;  %v404_v51 = vrot.slane %v395_v49, %v1457_v20 }
  0x7a   :  { %348 = vmatprep.subr.bf16.mxu0 %v1142_v52 }
  0x7b   :  { %594 = vmatpush2.bf16.msra.mxu1 %v1186_v63  ;;  %v1230_v63 = vld [vmem:[#allocation10] ss:$8 sps:$4 sm:$0xff]  }
  0x7c   :  { %595 = vmatprep.subr.bf16.mxu1 %v1187_v0  ;;  %v1370_v0 = vmov 0  }
  0x7d   :  { %349 = vmatpush2.bf16.msra.mxu0 %v1144_v55 }
  0x7e   :  { %1064 = vmatprep.subr.bf16.mxu0 %v1193_v4 }
  0x7f   :  { %596 = vmatpush2.bf16.msra.mxu1 %v1189_v1 }
  0x80   :  { %351 = vmatmul.mubr.bf16.vlgmr.msra.gmra.mxu0 %v112_v57  ;;  %597 = vmatprep.subr.bf16.mxu1 %v1190_v2  ;;  %v1030_v2 = vld [vmem:[%s1483_s6] ss:$0 sm:$0xff]  ;;  %s954_s6 = sshll.u32 %s1371_s18, 4  ;;  %s955_s6 = int_to_ptr.vmem [resolvable:$true] %s954_s6 }
  0x81   :  { %1065 = vmatpush3.bf16.msra.mxu0 %v1194_v5  ;;  %s1333_s19 = scalar_lea.vmem %s955_s6, 64  ;;  %p1338_p12 = scmp.lt.s32.totalorder %s955_s6, %s955_s6 }
  0x82   :  { %1066 = vmatprep.subr.bf16.mxu0 %v1195_v6  ;;  %p1334_p11 = scmp.ne.s32.totalorder %s955_s6, %s1333_s19  ;;  %p1339_p13 = scmp.lt.s32.totalorder %s1333_s19, %s1333_s19 }
  0x83   :  { %598 = vmatpush2.bf16.msra.mxu1 %v1192_v3 }
  0x84   :  { %895 = vmatprep.subr.bf16.mxu1 %v1211_v38  ;;  %p1340_p0 = por %p1339_p13, %p1338_p12 }
  0x85   :  { %1067 = vmatpush3.bf16.msra.mxu0 %v1196_v7 }
  0x86   :  { %1068 = vmatprep.subr.bf16.mxu0 %v1197_v8  ;;  %p1341_p1 = pnand %p1340_p0, %p1334_p11 }
  0x89   :  { %1069 = vmatpush3.bf16.msra.mxu0 %v1198_v9 }
  0x8a   :  { %1070 = vmatprep.subr.bf16.mxu0 %v1199_v10  ;;  %v803_v10 = vld [vmem:[%s1485_s8] sm:$0x3] }
  0x8d   :  { %1071 = vmatpush3.bf16.msra.mxu0 %v1200_v11  ;;  %v808_v11 = vrot.slane %v803_v10, %v1452_v18 }
  0x8e   :  { %1072 = vmatprep.subr.bf16.mxu0 %v1201_v12  ;;  %v812_v12 = vrot.slane %v803_v10, %v1457_v20 }
  0x91   :  { %1073 = vmatpush3.bf16.msra.mxu0 %v1202_v13 }
  0x92   :  { %1074 = vmatprep.subr.bf16.mxu0 %v1203_v14 }
  0x95   :  { %1075 = vmatpush3.bf16.msra.mxu0 %v1204_v15 }
  0x96   :  { %1076 = vmatprep.subr.bf16.mxu0 %v1205_v33 }
  0x99   :  { %1077 = vmatpush3.bf16.msra.mxu0 %v1206_v34 }
  0x9a   :  { %1078 = vmatprep.subr.bf16.mxu0 %v1207_v35 }
  0x9d   :  { %1079 = vmatpush3.bf16.msra.mxu0 %v1208_v36 }
 0x140   :  { %v352_v23 = vpop.f32.mrf.mxu0 }
 0x141   :  { %v353_v24 = vadd.f32 %v352_v23, %v151_v21 }
 0x142   :  { %v354_v25 = vpop.f32.mrf.mxu0 }
 0x143   :  { %v355_v26 = vadd.f32 %v354_v25, %v155_v22  ;;  %v359_v27 = vmax.f32 %v353_v24, 0.0 }
 0x144   :  { %v356_v28 = vpop.f32.mrf.mxu0 }
 0x145   :  { %v360_v29 = vmax.f32 %v355_v26, 0.0  ;;  %v361_v32 = vpack.c.bf16 %v359_v27, %v359_v27 }
 0x146   :  { %v357_v30 = vpop.f32.mrf.mxu0 }
 0x147   :  { %v362_v31 = vpack.c.bf16 %v360_v29, %v360_v29 }
 0x149   :  { %599 = vmatprep.mubr.bf16.mxu1 %v362_v31 }
 0x14a   :  { %600 = vmatmul.mubr.bf16.vlgmr.msra.gmra.mxu1 %v361_v32 }
 0x14b   :  { %896 = vmatpush1.bf16.msra.mxu1 %v1209_v37  ;;  %927 = vmatprep.mubr.bf16.mxu1 %v1370_v0 }
 0x14c   :  { %897 = vmatprep.subr.bf16.mxu1 %v1214_v39 }
 0x14f   :  { %898 = vmatpush1.bf16.msra.mxu1 %v1212_v40 }
 0x150   :  { %899 = vmatprep.subr.bf16.mxu1 %v1217_v41 }
 0x153   :  { %900 = vmatpush1.bf16.msra.mxu1 %v1215_v42 }
 0x154   :  { %901 = vmatprep.subr.bf16.mxu1 %v1220_v43 }
 0x157   :  { %902 = vmatpush1.bf16.msra.mxu1 %v1218_v44 }
 0x158   :  { %903 = vmatprep.subr.bf16.mxu1 %v1223_v45 }
 0x15b   :  { %904 = vmatpush1.bf16.msra.mxu1 %v1221_v46 }
 0x15c   :  { %905 = vmatprep.subr.bf16.mxu1 %v1226_v47 }
 0x15f   :  { %906 = vmatpush1.bf16.msra.mxu1 %v1224_v48 }
 0x160   :  { %907 = vmatprep.subr.bf16.mxu1 %v1229_v60 }
 0x163   :  { %908 = vmatpush1.bf16.msra.mxu1 %v1227_v61 }
 0x164   :  { %909 = vmatprep.subr.bf16.mxu1 %v1232_v62 }
 0x167   :  { %910 = vmatpush1.bf16.msra.mxu1 %v1230_v63 }
 0x20a   :  { %v601_v52 = vpop.f32.mrf.mxu1 }
 0x20b   :  { %v602_v53 = vadd.f32 %v601_v52, %v400_v50 }
 0x20c   :  { %v603_v54 = vpop.f32.mrf.mxu1 }
 0x20d   :  { %v604_v55 = vadd.f32 %v603_v54, %v404_v51  ;;  %v608_v58 = vpack.c.bf16 %v602_v53, %v602_v53 }
 0x20e   :  { %v605_v56 = vpop.f32.mrf.mxu1 }
 0x20f   :  { %v609_v57 = vpack.c.bf16 %v604_v55, %v604_v55 }
 0x210   :  { %v606_v59 = vpop.f32.mrf.mxu1 }
 0x211   :  { %777 = vmatprep.mubr.bf16.mxu0 %v609_v57 }
 0x212   :  { %778 = vmatmul.mubr.bf16.vlgmr.msra.gmra.mxu0 %v608_v58 }
 0x2d2   :  { %v1080_v1 = vpop.f32.mrf.mxu0 }
 0x2d4   :  { %v1081_v3 = vpop.f32.mrf.mxu0 }
 0x2d5   :  { %v1082_v4 = vadd.f32 %v1081_v3, %v1080_v1 }
 0x2d6   :  { %v1083_v5 = vpop.f32.mrf.mxu0 }
 0x2d7   :  { %v780_v6 = vadd.f32 %v1082_v4, %v1030_v2 }
 0x2d8   :  { %v1084_v7 = vpop.f32.mrf.mxu0 }
 0x2d9   :  { %v785_v8 = vmax.f32 %v780_v6, 0.0 }
 0x2db   :  { %v786_v9 = vpack.c.bf16 %v785_v8, %v785_v8 }
 0x2dd   :  { %928 = vmatmul.mubr.bf16.vlgmr.msra.gmra.mxu1 %v786_v9 }
 0x39d   :  { %v929_v13 = vpop.f32.mrf.mxu1 }
 0x39e   :  { %v930_v15 = vadd.f32 %v929_v13, %v808_v11 }
 0x39f   :  { %v931_v14 = vpop.f32.mrf.mxu1 }
 0x3a0   :  { %v932_v16 = vadd.f32 %v931_v14, %v812_v12 }
 0x3a1   :  { %v933_v17 = vpop.f32.mrf.mxu1 }
 0x3a2   :  { %v938_v19 = vcombine.low %v930_v15, %v932_v16 }
 0x3a3   :  { %v934_v21 = vpop.f32.mrf.mxu1 }
 0x3a4   :  { %1063 = vst.sshfl [vmem:[#allocation11] sm:$0x33 pattern:$0x76325410] %v938_v19 }
 0x3a5   :  { %1344 = shalt.err (!%p1341_p1)
}
 0x3a6   :  { %957 = dma.vmem_to_hbm [thread:$0]  %s955_s6, 64, %s1486_s9, [#allocation4]  }
 0x3a7   :  { %1359 = dma.done.wait [#allocation4], 64  }
 0x3a8   :  { %1360 = vsyncadd [#allocation4], 4294967232 }
 0x3a9   :  { %961 = vsyncpa [#allocation3], 1 }
 0x3aa   :  { %962 = vsyncpa [#allocation6], 1 }
 0x3ab   :  { %963 = vsyncpa [#allocation9], 1 }
 0x3ac   :  { %964 = vsyncpa [#allocation4], 1 }

// kernel: tpu_custom_call.1
= control target key start
LH: loop header
LB: loop body
LE: loop exit
PB: predicated region body
PF: predicated region fallthrough
CT: control target
= control target key end

     0   :  { %14 = vsyncpa [#allocation3], 0  ;;  %s1477_s0 = inlined_call_operand.hbm [shape: f32[2,256], index: 0, kind: input, shape index: {}]   ;;  %s1478_s1 = inlined_call_operand.hbm [shape: bf16[256,256], index: 1, kind: input, shape index: {}]   ;;  %s1479_s2 = inlined_call_operand.vmem [shape: f32[1,256], index: 2, kind: input, shape index: {}]   ;;  %s1480_s3 = inlined_call_operand.hbm [shape: bf16[256,256], index: 3, kind: input, shape index: {}]   ;;  %s1481_s4 = inlined_call_operand.vmem [shape: f32[1,256], index: 4, kind: input, shape index: {}]   ;;  %s1482_s5 = inlined_call_operand.hbm [shape: bf16[256,128], index: 5, kind: input, shape index: {}]   ;;  %s1483_s6 = inlined_call_operand.vmem [shape: f32[1,128], index: 6, kind: input, shape index: {}]   ;;  %s1484_s7 = inlined_call_operand.hbm [shape: bf16[128,256], index: 7, kind: input, shape index: {}]   ;;  %s1485_s8 = inlined_call_operand.vmem [shape: f32[1,256], index: 8, kind: input, shape index: {}]   ;;  %s1486_s9 = inlined_call_operand.hbm [shape: f32[2,256], index: 9, kind: output, shape index: {}]  }
   0x1   :  { %15 = vsyncpa [#allocation6], 0 }
   0x2   :  { %16 = vsyncpa [#allocation9], 0 }
   0x3   :  { %17 = vsyncpa [#allocation4], 0  ;;  %s1361_s30 = smov [#allocation5]  }
   0x4   :  { %s33_s10 = sshll.u32 %s1361_s30, 4  ;;  %s34_s10 = int_to_ptr.vmem [resolvable:$true] %s33_s10 }
   0x5   :  { %s1241_s11 = scalar_lea.vmem %s34_s10, 4096  ;;  %p1246_p1 = scmp.lt.s32.totalorder %s34_s10, %s34_s10 }
   0x6   :  { %p1242_p0 = scmp.ne.s32.totalorder %s34_s10, %s1241_s11  ;;  %p1247_p2 = scmp.lt.s32.totalorder %s1241_s11, %s1241_s11 }
   0x8   :  { %p1248_p3 = por %p1247_p2, %p1246_p1 }
   0xa   :  { %p1249_p4 = pnand %p1248_p3, %p1242_p0 }
   0xc   :  { %1252 = shalt.err (!%p1249_p4)
}
   0xd   :  { %s1362_s12 = smov 128   ;;  %s1363_s13 = smov 8  }
   0xe   :  { %39 = dma.hbm_to_vmem [thread:$0]  %s1478_s1, 4096, %s34_s10, [#allocation6], %s1362_s12, %s1362_s12, %s1363_s13  }
   0xf   :  { %s1364_s16 = smov [#allocation8]  }
  0x10   :  { %s61_s17 = sshll.u32 %s1364_s16, 4  ;;  %s62_s17 = int_to_ptr.vmem [resolvable:$true] %s61_s17 }
  0x11   :  { %s1261_s18 = scalar_lea.vmem %s62_s17, 2048  ;;  %p1266_p6 = scmp.lt.s32.totalorder %s62_s17, %s62_s17 }
  0x12   :  { %p1262_p5 = scmp.ne.s32.totalorder %s62_s17, %s1261_s18  ;;  %p1267_p7 = scmp.lt.s32.totalorder %s1261_s18, %s1261_s18 }
  0x14   :  { %p1268_p8 = por %p1267_p7, %p1266_p6 }
  0x16   :  { %p1269_p9 = pnand %p1268_p8, %p1262_p5 }
  0x18   :  { %1272 = shalt.err (!%p1269_p9)
}
  0x19   :  { %s1365_s19 = smov 64   ;;  %s1366_s20 = smov 4  }
  0x1a   :  { %67 = dma.hbm_to_vmem [thread:$0]  %s1482_s5, 2048, %s62_s17, [#allocation9], %s1365_s19, %s1365_s19, %s1366_s20  }
  0x1b   :  { %s1367_s23 = smov [#allocation2]   ;;  %s1368_s25 = smov [#allocation7]  }
  0x1c   :  { %s24_s24 = sshll.u32 %s1367_s23, 4  ;;  %s47_s1 = sshll.u32 %s1368_s25, 4  ;;  %s25_s24 = int_to_ptr.vmem [resolvable:$true] %s24_s24  ;;  %s48_s1 = int_to_ptr.vmem [resolvable:$true] %s47_s1 }
  0x1d   :  { %s1281_s26 = scalar_lea.vmem %s25_s24, 64  ;;  %p1286_p11 = scmp.lt.s32.totalorder %s25_s24, %s25_s24 }
  0x1e   :  { %p1282_p10 = scmp.ne.s32.totalorder %s25_s24, %s1281_s26  ;;  %p1287_p12 = scmp.lt.s32.totalorder %s1281_s26, %s1281_s26 }
  0x20   :  { %p1288_p13 = por %p1287_p12, %p1286_p11 }
  0x22   :  { %p1289_p0 = pnand %p1288_p13, %p1282_p10 }
  0x24   :  { %1292 = shalt.err (!%p1289_p0)
}
  0x25   :  { %27 = dma.hbm_to_vmem [thread:$0]  %s1477_s0, 64, %s25_s24, [#allocation3]  }
  0x26   :  { %s1301_s29 = scalar_lea.vmem %s48_s1, 4096  ;;  %p1306_p2 = scmp.lt.s32.totalorder %s48_s1, %s48_s1 }
  0x27   :  { %p1302_p1 = scmp.ne.s32.totalorder %s48_s1, %s1301_s29  ;;  %p1307_p3 = scmp.lt.s32.totalorder %s1301_s29, %s1301_s29 }
  0x29   :  { %p1308_p4 = por %p1307_p3, %p1306_p2 }
  0x2b   :  { %p1309_p5 = pnand %p1308_p4, %p1302_p1 }
  0x2d   :  { %1312 = shalt.err (!%p1309_p5)
}
  0x2e   :  { %53 = dma.hbm_to_vmem [thread:$0]  %s1480_s3, 4096, %s48_s1, [#allocation6], %s1362_s12, %s1362_s12, %s1363_s13  }
  0x2f   :  { %s1369_s10 = smov [#allocation10]  }
  0x30   :  { %s75_s11 = sshll.u32 %s1369_s10, 4  ;;  %s76_s11 = int_to_ptr.vmem [resolvable:$true] %s75_s11 }
  0x31   :  { %s1321_s14 = scalar_lea.vmem %s76_s11, 2048  ;;  %p1326_p7 = scmp.lt.s32.totalorder %s76_s11, %s76_s11 }
  0x32   :  { %p1322_p6 = scmp.ne.s32.totalorder %s76_s11, %s1321_s14  ;;  %p1327_p8 = scmp.lt.s32.totalorder %s1321_s14, %s1321_s14 }
  0x34   :  { %p1328_p9 = por %p1327_p8, %p1326_p7 }
  0x36   :  { %p1329_p10 = pnand %p1328_p9, %p1322_p6 }
  0x38   :  { %1332 = shalt.err (!%p1329_p10)
}
  0x39   :  { %81 = dma.hbm_to_vmem [thread:$0]  %s1484_s7, 2048, %s76_s11, [#allocation9], %s1362_s12, %s1362_s12, %s1363_s13  }
  0x3a   :  { %1353 = dma.done.wait [#allocation3], 64  }
  0x3b   :  { %1354 = vsyncadd [#allocation3], 4294967232 }
  0x3c   :  { %1355 = dma.done.wait [#allocation6], 8192  }
  0x3d   :  { %1356 = vsyncadd [#allocation6], 4294959104 }
  0x3e   :  { %1357 = dma.done.wait [#allocation9], 4096  }
  0x3f   :  { %1358 = vsyncadd [#allocation9], 4294963200  ;;  %v1097_v0 = vld [vmem:[#allocation5 + $0x74] ss:$8 sps:$4 sm:$0xff]   ;;  %v1099_v1 = vld [vmem:[#allocation5 + $0x70] ss:$8 sps:$4 sm:$0xff]  }
  0x40   :  { %318 = vmatprep.subr.bf16.mxu0 %v1097_v0  ;;  %v1100_v2 = vld [vmem:[#allocation5 + $0x64] ss:$8 sps:$4 sm:$0xff]   ;;  %v1102_v3 = vld [vmem:[#allocation5 + $0x60] ss:$8 sps:$4 sm:$0xff]   ;;  %v1103_v4 = vld [vmem:[#allocation5 + $0x54] ss:$8 sps:$4 sm:$0xff]  }
  0x41   :  { %319 = vmatpush1.bf16.msra.mxu0 %v1099_v1  ;;  %v1105_v5 = vld [vmem:[#allocation5 + $0x50] ss:$8 sps:$4 sm:$0xff]   ;;  %v1106_v6 = vld [vmem:[#allocation5 + $0x44] ss:$8 sps:$4 sm:$0xff]   ;;  %v1108_v7 = vld [vmem:[#allocation5 + $0x40] ss:$8 sps:$4 sm:$0xff]  }
  0x42   :  { %320 = vmatprep.subr.bf16.mxu0 %v1100_v2  ;;  %v1109_v8 = vld [vmem:[#allocation5 + $0x34] ss:$8 sps:$4 sm:$0xff]   ;;  %v1111_v9 = vld [vmem:[#allocation5 + $0x30] ss:$8 sps:$4 sm:$0xff]   ;;  %v1112_v10 = vld [vmem:[#allocation5 + $0x24] ss:$8 sps:$4 sm:$0xff]  }
  0x43   :  { %v1114_v11 = vld [vmem:[#allocation5 + $0x20] ss:$8 sps:$4 sm:$0xff]   ;;  %v1115_v12 = vld [vmem:[#allocation5 + $0x14] ss:$8 sps:$4 sm:$0xff]   ;;  %v1117_v13 = vld [vmem:[#allocation5 + $0x10] ss:$8 sps:$4 sm:$0xff]  }
  0x44   :  { %v1446_v14 = vld.sshfl [vmem:[#allocation2] sm:$0x33 pattern:$0x76325410]  ;;  %v1147_v17 = vld [vmem:[#allocation7 + $0x70] ss:$8 sps:$4 sm:$0xff]  }
  0x45   :  { %321 = vmatpush1.bf16.msra.mxu0 %v1102_v3  ;;  %v109_v15 = vcombine.high %v1446_v14, %v1446_v14  ;;  %v1145_v16 = vld [vmem:[#allocation7 + $0x74] ss:$8 sps:$4 sm:$0xff]   ;;  %v1118_v18 = vld [vmem:[#allocation5 + $0x4] ss:$8 sps:$4 sm:$0xff]   ;;  %v1150_v21 = vld [vmem:[#allocation7 + $0x60] ss:$8 sps:$4 sm:$0xff]   ;;  %v112_v57 = vpack.c.bf16 %v1446_v14, %v1446_v14 }
  0x46   :  { %322 = vmatprep.subr.bf16.mxu0 %v1103_v4  ;;  %567 = vmatprep.subr.bf16.mxu1 %v1145_v16  ;;  %v1148_v20 = vld [vmem:[#allocation7 + $0x64] ss:$8 sps:$4 sm:$0xff]   ;;  %v1151_v22 = vld [vmem:[#allocation7 + $0x54] ss:$8 sps:$4 sm:$0xff]   ;;  %v1120_v23 = vld [vmem:[#allocation5] ss:$8 sps:$4 sm:$0xff]   ;;  %v148_v16 = vlaneseq }
  0x47   :  { %v113_v19 = vpack.c.bf16 %v109_v15, %v109_v15  ;;  %568 = vmatpush1.bf16.msra.mxu1 %v1147_v17  ;;  %v1121_v24 = vld [vmem:[#allocation5 + $0xf4] ss:$8 sps:$4 sm:$0xff]   ;;  %v1153_v25 = vld [vmem:[#allocation7 + $0x50] ss:$8 sps:$4 sm:$0xff]   ;;  %v1154_v26 = vld [vmem:[#allocation7 + $0x44] ss:$8 sps:$4 sm:$0xff]  }
  0x48   :  { %569 = vmatprep.subr.bf16.mxu1 %v1148_v20  ;;  %v1123_v27 = vld [vmem:[#allocation5 + $0xf0] ss:$8 sps:$4 sm:$0xff]   ;;  %v1124_v28 = vld [vmem:[#allocation5 + $0xe4] ss:$8 sps:$4 sm:$0xff]   ;;  %v1156_v29 = vld [vmem:[#allocation7 + $0x40] ss:$8 sps:$4 sm:$0xff]  }
  0x49   :  { %323 = vmatpush1.bf16.msra.mxu0 %v1105_v5  ;;  %350 = vmatprep.mubr.bf16.mxu0 %v113_v19  ;;  %v1157_v30 = vld [vmem:[#allocation7 + $0x34] ss:$8 sps:$4 sm:$0xff]   ;;  %v1126_v31 = vld [vmem:[#allocation5 + $0xe0] ss:$8 sps:$4 sm:$0xff]   ;;  %v1159_v33 = vld [vmem:[#allocation7 + $0x30] ss:$8 sps:$4 sm:$0xff]  }
  0x4a   :  { %324 = vmatprep.subr.bf16.mxu0 %v1106_v6  ;;  %v1127_v32 = vld [vmem:[#allocation5 + $0xd4] ss:$8 sps:$4 sm:$0xff]   ;;  %v1160_v34 = vld [vmem:[#allocation7 + $0x24] ss:$8 sps:$4 sm:$0xff]   ;;  %v1129_v35 = vld [vmem:[#allocation5 + $0xd0] ss:$8 sps:$4 sm:$0xff]  }
  0x4b   :  { %570 = vmatpush1.bf16.msra.mxu1 %v1150_v21  ;;  %v1130_v36 = vld [vmem:[#allocation5 + $0xc4] ss:$8 sps:$4 sm:$0xff]   ;;  %v1162_v37 = vld [vmem:[#allocation7 + $0x20] ss:$8 sps:$4 sm:$0xff]   ;;  %v1163_v38 = vld [vmem:[#allocation7 + $0x14] ss:$8 sps:$4 sm:$0xff]  }
  0x4c   :  { %571 = vmatprep.subr.bf16.mxu1 %v1151_v22  ;;  %v1132_v39 = vld [vmem:[#allocation5 + $0xc0] ss:$8 sps:$4 sm:$0xff]   ;;  %v1133_v40 = vld [vmem:[#allocation5 + $0xb4] ss:$8 sps:$4 sm:$0xff]   ;;  %v1165_v41 = vld [vmem:[#allocation7 + $0x10] ss:$8 sps:$4 sm:$0xff]  }
  0x4d   :  { %325 = vmatpush1.bf16.msra.mxu0 %v1108_v7  ;;  %v1166_v42 = vld [vmem:[#allocation7 + $0x4] ss:$8 sps:$4 sm:$0xff]   ;;  %v1135_v43 = vld [vmem:[#allocation5 + $0xb0] ss:$8 sps:$4 sm:$0xff]   ;;  %v1168_v45 = vld [vmem:[#allocation7] ss:$8 sps:$4 sm:$0xff]  }
  0x4e   :  { %326 = vmatprep.subr.bf16.mxu0 %v1109_v8  ;;  %v1136_v44 = vld [vmem:[#allocation5 + $0xa4] ss:$8 sps:$4 sm:$0xff]   ;;  %v1169_v46 = vld [vmem:[#allocation7 + $0xf4] ss:$8 sps:$4 sm:$0xff]   ;;  %v1138_v47 = vld [vmem:[#allocation5 + $0xa0] ss:$8 sps:$4 sm:$0xff]  }
  0x4f   :  { %572 = vmatpush1.bf16.msra.mxu1 %v1153_v25  ;;  %v1139_v48 = vld [vmem:[#allocation5 + $0x94] ss:$8 sps:$4 sm:$0xff]   ;;  %v1171_v49 = vld [vmem:[#allocation7 + $0xf0] ss:$8 sps:$4 sm:$0xff]   ;;  %v1172_v50 = vld [vmem:[#allocation7 + $0xe4] ss:$8 sps:$4 sm:$0xff]  }
  0x50   :  { %573 = vmatprep.subr.bf16.mxu1 %v1154_v26  ;;  %v1141_v51 = vld [vmem:[#allocation5 + $0x90] ss:$8 sps:$4 sm:$0xff]   ;;  %v1142_v52 = vld [vmem:[#allocation5 + $0x84] ss:$8 sps:$4 sm:$0xff]   ;;  %v1174_v53 = vld [vmem:[#allocation7 + $0xe0] ss:$8 sps:$4 sm:$0xff]  }
  0x51   :  { %327 = vmatpush1.bf16.msra.mxu0 %v1111_v9  ;;  %v1175_v54 = vld [vmem:[#allocation7 + $0xd4] ss:$8 sps:$4 sm:$0xff]   ;;  %v1144_v55 = vld [vmem:[#allocation5 + $0x80] ss:$8 sps:$4 sm:$0xff]   ;;  %v1177_v56 = vld [vmem:[#allocation7 + $0xd0] ss:$8 sps:$4 sm:$0xff]  }
  0x52   :  { %328 = vmatprep.subr.bf16.mxu0 %v1112_v10  ;;  %v1178_v58 = vld [vmem:[#allocation7 + $0xc4] ss:$8 sps:$4 sm:$0xff]   ;;  %v1180_v59 = vld [vmem:[#allocation7 + $0xc0] ss:$8 sps:$4 sm:$0xff]   ;;  %v1181_v60 = vld [vmem:[#allocation7 + $0xb4] ss:$8 sps:$4 sm:$0xff]  }
  0x53   :  { %574 = vmatpush1.bf16.msra.mxu1 %v1156_v29  ;;  %v1183_v61 = vld [vmem:[#allocation7 + $0xb0] ss:$8 sps:$4 sm:$0xff]   ;;  %v1184_v62 = vld [vmem:[#allocation7 + $0xa4] ss:$8 sps:$4 sm:$0xff]   ;;  %v1186_v63 = vld [vmem:[#allocation7 + $0xa0] ss:$8 sps:$4 sm:$0xff]  }
  0x54   :  { %575 = vmatprep.subr.bf16.mxu1 %v1157_v30  ;;  %v1187_v0 = vld [vmem:[#allocation7 + $0x94] ss:$8 sps:$4 sm:$0xff]   ;;  %v1189_v1 = vld [vmem:[#allocation7 + $0x90] ss:$8 sps:$4 sm:$0xff]   ;;  %v1190_v2 = vld [vmem:[#allocation7 + $0x84] ss:$8 sps:$4 sm:$0xff]  }
  0x55   :  { %329 = vmatpush1.bf16.msra.mxu0 %v1114_v11  ;;  %v1192_v3 = vld [vmem:[#allocation7 + $0x80] ss:$8 sps:$4 sm:$0xff]   ;;  %v1193_v4 = vld [vmem:[#allocation8 + $0x78] sm:$0xff]   ;;  %v1195_v6 = vld [vmem:[#allocation8 + $0x70] sm:$0xff]   ;;  %v149_v17 = vshrl.u32 %v148_v16, 7  ;;  %s1371_s18 = smov [#allocation11]  }
  0x56   :  { %330 = vmatprep.subr.bf16.mxu0 %v1115_v12  ;;  %v1194_v5 = vld [vmem:[#allocation8 + $0x38] sm:$0xff]   ;;  %v1196_v7 = vld [vmem:[#allocation8 + $0x30] sm:$0xff]   ;;  %v1197_v8 = vld [vmem:[#allocation8 + $0x68] sm:$0xff]  }
  0x57   :  { %576 = vmatpush1.bf16.msra.mxu1 %v1159_v33  ;;  %v1198_v9 = vld [vmem:[#allocation8 + $0x28] sm:$0xff]   ;;  %v1199_v10 = vld [vmem:[#allocation8 + $0x60] sm:$0xff]   ;;  %v1201_v12 = vld [vmem:[#allocation8 + $0x58] sm:$0xff]   ;;  %v1457_v20 = vsub.s32 1, %v149_v17 }
  0x58   :  { %577 = vmatprep.subr.bf16.mxu1 %v1160_v34  ;;  %v1200_v11 = vld [vmem:[#allocation8 + $0x20] sm:$0xff]   ;;  %v1203_v14 = vld [vmem:[#allocation8 + $0x50] sm:$0xff]   ;;  %v146_v19 = vld [vmem:[%s1479_s2] sm:$0x3] }
  0x59   :  { %331 = vmatpush1.bf16.msra.mxu0 %v1117_v13  ;;  %v1202_v13 = vld [vmem:[#allocation8 + $0x18] sm:$0xff]   ;;  %v1204_v15 = vld [vmem:[#allocation8 + $0x10] sm:$0xff]   ;;  %v155_v22 = vrot.slane %v146_v19, %v1457_v20  ;;  %v1205_v33 = vld [vmem:[#allocation8 + $0x48] sm:$0xff]  }
  0x5a   :  { %332 = vmatprep.subr.bf16.mxu0 %v1118_v18  ;;  %v1452_v18 = vsub.s32 0, %v149_v17  ;;  %v1206_v34 = vld [vmem:[#allocation8 + $0x8] sm:$0xff]  }
  0x5b   :  { %578 = vmatpush1.bf16.msra.mxu1 %v1162_v37  ;;  %v1209_v37 = vld [vmem:[#allocation10 + $0x70] ss:$8 sps:$4 sm:$0xff]  }
  0x5c   :  { %579 = vmatprep.subr.bf16.mxu1 %v1163_v38  ;;  %v151_v21 = vrot.slane %v146_v19, %v1452_v18  ;;  %v1211_v38 = vld [vmem:[#allocation10 + $0x74] ss:$8 sps:$4 sm:$0xff]  }
  0x5d   :  { %333 = vmatpush1.bf16.msra.mxu0 %v1120_v23 }
  0x5e   :  { %334 = vmatprep.subr.bf16.mxu0 %v1121_v24 }
  0x5f   :  { %580 = vmatpush1.bf16.msra.mxu1 %v1165_v41  ;;  %v1217_v41 = vld [vmem:[#allocation10 + $0x54] ss:$8 sps:$4 sm:$0xff]  }
  0x60   :  { %581 = vmatprep.subr.bf16.mxu1 %v1166_v42  ;;  %v1215_v42 = vld [vmem:[#allocation10 + $0x50] ss:$8 sps:$4 sm:$0xff]  }
  0x61   :  { %335 = vmatpush2.bf16.msra.mxu0 %v1123_v27 }
  0x62   :  { %336 = vmatprep.subr.bf16.mxu0 %v1124_v28 }
  0x63   :  { %582 = vmatpush1.bf16.msra.mxu1 %v1168_v45  ;;  %v1223_v45 = vld [vmem:[#allocation10 + $0x34] ss:$8 sps:$4 sm:$0xff]  }
  0x64   :  { %583 = vmatprep.subr.bf16.mxu1 %v1169_v46  ;;  %v1221_v46 = vld [vmem:[#allocation10 + $0x30] ss:$8 sps:$4 sm:$0xff]  }
  0x65   :  { %337 = vmatpush2.bf16.msra.mxu0 %v1126_v31 }
  0x66   :  { %338 = vmatprep.subr.bf16.mxu0 %v1127_v32 }
  0x67   :  { %584 = vmatpush2.bf16.msra.mxu1 %v1171_v49  ;;  %v395_v49 = vld [vmem:[%s1481_s4] sm:$0x3] }
  0x68   :  { %585 = vmatprep.subr.bf16.mxu1 %v1172_v50  ;;  %v400_v50 = vrot.slane %v395_v49, %v1452_v18 }
  0x69   :  { %339 = vmatpush2.bf16.msra.mxu0 %v1129_v35  ;;  %v1207_v35 = vld [vmem:[#allocation8 + $0x40] sm:$0xff]  }
  0x6a   :  { %340 = vmatprep.subr.bf16.mxu0 %v1130_v36  ;;  %v1208_v36 = vld [vmem:[#allocation8] sm:$0xff]  }
  0x6b   :  { %586 = vmatpush2.bf16.msra.mxu1 %v1174_v53 }
  0x6c   :  { %587 = vmatprep.subr.bf16.mxu1 %v1175_v54 }
  0x6d   :  { %341 = vmatpush2.bf16.msra.mxu0 %v1132_v39  ;;  %v1214_v39 = vld [vmem:[#allocation10 + $0x64] ss:$8 sps:$4 sm:$0xff]  }
  0x6e   :  { %342 = vmatprep.subr.bf16.mxu0 %v1133_v40  ;;  %v1212_v40 = vld [vmem:[#allocation10 + $0x60] ss:$8 sps:$4 sm:$0xff]  }
  0x6f   :  { %588 = vmatpush2.bf16.msra.mxu1 %v1177_v56 }
  0x70   :  { %589 = vmatprep.subr.bf16.mxu1 %v1178_v58 }
  0x71   :  { %343 = vmatpush2.bf16.msra.mxu0 %v1135_v43  ;;  %v1220_v43 = vld [vmem:[#allocation10 + $0x44] ss:$8 sps:$4 sm:$0xff]  }
  0x72   :  { %344 = vmatprep.subr.bf16.mxu0 %v1136_v44  ;;  %v1218_v44 = vld [vmem:[#allocation10 + $0x40] ss:$8 sps:$4 sm:$0xff]  }
  0x73   :  { %590 = vmatpush2.bf16.msra.mxu1 %v1180_v59 }
  0x74   :  { %591 = vmatprep.subr.bf16.mxu1 %v1181_v60  ;;  %v1229_v60 = vld [vmem:[#allocation10 + $0x14] ss:$8 sps:$4 sm:$0xff]  }
  0x75   :  { %345 = vmatpush2.bf16.msra.mxu0 %v1138_v47  ;;  %v1226_v47 = vld [vmem:[#allocation10 + $0x24] ss:$8 sps:$4 sm:$0xff]  }
  0x76   :  { %346 = vmatprep.subr.bf16.mxu0 %v1139_v48  ;;  %v1224_v48 = vld [vmem:[#allocation10 + $0x20] ss:$8 sps:$4 sm:$0xff]  }
  0x77   :  { %592 = vmatpush2.bf16.msra.mxu1 %v1183_v61  ;;  %v1227_v61 = vld [vmem:[#allocation10 + $0x10] ss:$8 sps:$4 sm:$0xff]  }
  0x78   :  { %593 = vmatprep.subr.bf16.mxu1 %v1184_v62  ;;  %v1232_v62 = vld [vmem:[#allocation10 + $0x4] ss:$8 sps:$4 sm:$0xff]  }
  0x79   :  { %347 = vmatpush2.bf16.msra.mxu0 %v1141_v51  ;;  %v404_v51 = vrot.slane %v395_v49, %v1457_v20 }
  0x7a   :  { %348 = vmatprep.subr.bf16.mxu0 %v1142_v52 }
  0x7b   :  { %594 = vmatpush2.bf16.msra.mxu1 %v1186_v63  ;;  %v1230_v63 = vld [vmem:[#allocation10] ss:$8 sps:$4 sm:$0xff]  }
  0x7c   :  { %595 = vmatprep.subr.bf16.mxu1 %v1187_v0  ;;  %v1370_v0 = vmov 0  }
  0x7d   :  { %349 = vmatpush2.bf16.msra.mxu0 %v1144_v55 }
  0x7e   :  { %1064 = vmatprep.subr.bf16.mxu0 %v1193_v4 }
  0x7f   :  { %596 = vmatpush2.bf16.msra.mxu1 %v1189_v1 }
  0x80   :  { %351 = vmatmul.mubr.bf16.vlgmr.msra.gmra.mxu0 %v112_v57  ;;  %597 = vmatprep.subr.bf16.mxu1 %v1190_v2  ;;  %v1030_v2 = vld [vmem:[%s1483_s6] ss:$0 sm:$0xff]  ;;  %s954_s6 = sshll.u32 %s1371_s18, 4  ;;  %s955_s6 = int_to_ptr.vmem [resolvable:$true] %s954_s6 }
  0x81   :  { %1065 = vmatpush3.bf16.msra.mxu0 %v1194_v5  ;;  %s1333_s19 = scalar_lea.vmem %s955_s6, 64  ;;  %p1338_p12 = scmp.lt.s32.totalorder %s955_s6, %s955_s6 }
  0x82   :  { %1066 = vmatprep.subr.bf16.mxu0 %v1195_v6  ;;  %p1334_p11 = scmp.ne.s32.totalorder %s955_s6, %s1333_s19  ;;  %p1339_p13 = scmp.lt.s32.totalorder %s1333_s19, %s1333_s19 }
  0x83   :  { %598 = vmatpush2.bf16.msra.mxu1 %v1192_v3 }
  0x84   :  { %895 = vmatprep.subr.bf16.mxu1 %v1211_v38  ;;  %p1340_p0 = por %p1339_p13, %p1338_p12 }
  0x85   :  { %1067 = vmatpush3.bf16.msra.mxu0 %v1196_v7 }
  0x86   :  { %1068 = vmatprep.subr.bf16.mxu0 %v1197_v8  ;;  %p1341_p1 = pnand %p1340_p0, %p1334_p11 }
  0x89   :  { %1069 = vmatpush3.bf16.msra.mxu0 %v1198_v9 }
  0x8a   :  { %1070 = vmatprep.subr.bf16.mxu0 %v1199_v10  ;;  %v803_v10 = vld [vmem:[%s1485_s8] sm:$0x3] }
  0x8d   :  { %1071 = vmatpush3.bf16.msra.mxu0 %v1200_v11  ;;  %v808_v11 = vrot.slane %v803_v10, %v1452_v18 }
  0x8e   :  { %1072 = vmatprep.subr.bf16.mxu0 %v1201_v12  ;;  %v812_v12 = vrot.slane %v803_v10, %v1457_v20 }
  0x91   :  { %1073 = vmatpush3.bf16.msra.mxu0 %v1202_v13 }
  0x92   :  { %1074 = vmatprep.subr.bf16.mxu0 %v1203_v14 }
  0x95   :  { %1075 = vmatpush3.bf16.msra.mxu0 %v1204_v15 }
  0x96   :  { %1076 = vmatprep.subr.bf16.mxu0 %v1205_v33 }
  0x99   :  { %1077 = vmatpush3.bf16.msra.mxu0 %v1206_v34 }
  0x9a   :  { %1078 = vmatprep.subr.bf16.mxu0 %v1207_v35 }
  0x9d   :  { %1079 = vmatpush3.bf16.msra.mxu0 %v1208_v36 }
 0x140   :  { %v352_v23 = vpop.f32.mrf.mxu0 }
 0x141   :  { %v353_v24 = vadd.f32 %v352_v23, %v151_v21 }
 0x142   :  { %v354_v25 = vpop.f32.mrf.mxu0 }
 0x143   :  { %v355_v26 = vadd.f32 %v354_v25, %v155_v22  ;;  %v359_v27 = vmax.f32 %v353_v24, 0.0 }
 0x144   :  { %v356_v28 = vpop.f32.mrf.mxu0 }
 0x145   :  { %v360_v29 = vmax.f32 %v355_v26, 0.0  ;;  %v361_v32 = vpack.c.bf16 %v359_v27, %v359_v27 }
 0x146   :  { %v357_v30 = vpop.f32.mrf.mxu0 }
 0x147   :  { %v362_v31 = vpack.c.bf16 %v360_v29, %v360_v29 }
 0x149   :  { %599 = vmatprep.mubr.bf16.mxu1 %v362_v31 }
 0x14a   :  { %600 = vmatmul.mubr.bf16.vlgmr.msra.gmra.mxu1 %v361_v32 }
 0x14b   :  { %896 = vmatpush1.bf16.msra.mxu1 %v1209_v37  ;;  %927 = vmatprep.mubr.bf16.mxu1 %v1370_v0 }
 0x14c   :  { %897 = vmatprep.subr.bf16.mxu1 %v1214_v39 }
 0x14f   :  { %898 = vmatpush1.bf16.msra.mxu1 %v1212_v40 }
 0x150   :  { %899 = vmatprep.subr.bf16.mxu1 %v1217_v41 }
 0x153   :  { %900 = vmatpush1.bf16.msra.mxu1 %v1215_v42 }
 0x154   :  { %901 = vmatprep.subr.bf16.mxu1 %v1220_v43 }
 0x157   :  { %902 = vmatpush1.bf16.msra.mxu1 %v1218_v44 }
 0x158   :  { %903 = vmatprep.subr.bf16.mxu1 %v1223_v45 }
 0x15b   :  { %904 = vmatpush1.bf16.msra.mxu1 %v1221_v46 }
 0x15c   :  { %905 = vmatprep.subr.bf16.mxu1 %v1226_v47 }
 0x15f   :  { %906 = vmatpush1.bf16.msra.mxu1 %v1224_v48 }
 0x160   :  { %907 = vmatprep.subr.bf16.mxu1 %v1229_v60 }
 0x163   :  { %908 = vmatpush1.bf16.msra.mxu1 %v1227_v61 }
 0x164   :  { %909 = vmatprep.subr.bf16.mxu1 %v1232_v62 }
 0x167   :  { %910 = vmatpush1.bf16.msra.mxu1 %v1230_v63 }
 0x20a   :  { %v601_v52 = vpop.f32.mrf.mxu1 }
 0x20b   :  { %v602_v53 = vadd.f32 %v601_v52, %v400_v50 }
 0x20c   :  { %v603_v54 = vpop.f32.mrf.mxu1 }
 0x20d   :  { %v604_v55 = vadd.f32 %v603_v54, %v404_v51  ;;  %v608_v58 = vpack.c.bf16 %v602_v53, %v602_v53 }
 0x20e   :  { %v605_v56 = vpop.f32.mrf.mxu1 }
 0x20f   :  { %v609_v57 = vpack.c.bf16 %v604_v55, %v604_v55 }
 0x210   :  { %v606_v59 = vpop.f32.mrf.mxu1 }
 0x211   :  { %777 = vmatprep.mubr.bf16.mxu0 %v609_v57 }
 0x212   :  { %778 = vmatmul.mubr.bf16.vlgmr.msra.gmra.mxu0 %v608_v58 }
 0x2d2   :  { %v1080_v1 = vpop.f32.mrf.mxu0 }
 0x2d4   :  { %v1081_v3 = vpop.f32.mrf.mxu0 }
 0x2d5   :  { %v1082_v4 = vadd.f32 %v1081_v3, %v1080_v1 }
 0x2d6   :  { %v1083_v5 = vpop.f32.mrf.mxu0 }
 0x2d7   :  { %v780_v6 = vadd.f32 %v1082_v4, %v1030_v2 }
 0x2d8   :  { %v1084_v7 = vpop.f32.mrf.mxu0 }
 0x2d9   :  { %v785_v8 = vmax.f32 %v780_v6, 0.0 }
 0x2db   :  { %v786_v9 = vpack.c.bf16 %v785_v8, %v785_v8 }
 0x2dd   :  { %928 = vmatmul.mubr.bf16.vlgmr.msra.gmra.mxu1 %v786_v9 }
 0x39d   :  { %v929_v13 = vpop.f32.mrf.mxu1 }
 0x39e   :  { %v930_v15 = vadd.f32 %v929_v13, %v808_v11 }
 0x39f   :  { %v931_v14 = vpop.f32.mrf.mxu1 }
 0x3a0   :  { %v932_v16 = vadd.f32 %v931_v14, %v812_v12 }
 0x3a1   :  { %v933_v17 = vpop.f32.mrf.mxu1 }
 0x3a2   :  { %v938_v19 = vcombine.low %v930_v15, %v932_v16 }
 0x3a3   :  { %v934_v21 = vpop.f32.mrf.mxu1 }
 0x3a4   :  { %1063 = vst.sshfl [vmem:[#allocation11] sm:$0x33 pattern:$0x76325410] %v938_v19 }
 0x3a5   :  { %1344 = shalt.err (!%p1341_p1)
}
 0x3a6   :  { %957 = dma.vmem_to_hbm [thread:$0]  %s955_s6, 64, %s1486_s9, [#allocation4]  }
 0x3a7   :  { %1359 = dma.done.wait [#allocation4], 64  }
 0x3a8   :  { %1360 = vsyncadd [#allocation4], 4294967232 }
 0x3a9   :  { %961 = vsyncpa [#allocation3], 1 }
 0x3aa   :  { %962 = vsyncpa [#allocation6], 1 }
 0x3ab   :  { %963 = vsyncpa [#allocation9], 1 }
 0x3ac   :  { %964 = vsyncpa [#allocation4], 1 }

</bundles_post_ra>
